<compile_context>
chip_gen: v7x
topology: tpu7x:2x2x1
jax: 0.10.0
libtpu: 0.0.40
codegen_flags: <defaults>
</compile_context>

<pallas_src>
import jax
import jax.numpy as jnp
from jax.experimental import pallas as pl
from jax.experimental.pallas import tpu as pltpu


# ------------------------------- kernel -------------------------------------

def autoencoder_kernel(x_ref, *refs):
    """Full 10-layer MLP forward for one batch tile.

    refs = (w0, b0, w1, b1, ..., w9, b9, out).
    Weights are bf16 (in, out); biases are f32 (1, out); x / out are f32.
    """
    out_ref = refs[-1]
    param_refs = refs[:-1]
    n_layers = len(param_refs) // 2

    h = x_ref[...].astype(jnp.float32)
    for i in range(n_layers):
        w = param_refs[2 * i][...]                 # bf16 (in, out)
        b = param_refs[2 * i + 1][...]             # f32  (1, out) -> broadcasts over rows
        # bf16 x bf16 -> f32 accumulation on the MXU; bias-add / ReLU in f32 on the VPU.
        h = jnp.dot(h.astype(jnp.bfloat16), w,
                    preferred_element_type=jnp.float32) + b
        if i != n_layers - 1:                      # final decoder Linear has no ReLU
            h = jnp.maximum(h, 0.0)
    out_ref[...] = h.astype(out_ref.dtype)


# ------------------------------ host wrapper ---------------------------------

def _round_up(n, m):
    return ((n + m - 1) // m) * m


def _default_bm():
    """Batch-tile rows: 128 fills a v5e (128-wide) MXU pass; 256 for v6e/v7x."""
    try:
        kind = jax.devices()[0].device_kind.lower()
    except Exception:
        kind = ""
    if "v5 lite" in kind or "v5e" in kind or "v5lite" in kind:
        return 128
    return 256


def _pad_params_lane_dense(params, lane=128):
    """Zero-pad internal layer widths up to a multiple of 128 lanes.

    Exact transformation: padded output columns have zero weights + zero bias -> 0,
    ReLU(0) = 0, and the matching padded input rows of the next layer are zero too.
    First-layer input width and last-layer output width are left untouched.
    """
    n = len(params)
    padded = []
    prev_out = params[0][0].shape[0]               # true input width (never padded)
    for i, (w, b) in enumerate(params):
        d_in, d_out = w.shape
        p_in = prev_out
        p_out = d_out if i == n - 1 else _round_up(d_out, lane)
        w_p = jnp.zeros((p_in, p_out), w.dtype).at[:d_in, :d_out].set(w)
        b_p = jnp.zeros((p_out,), b.dtype).at[:d_out].set(b)
        padded.append((w_p, b_p))
        prev_out = p_out
    return padded


def autoencoder_forward(x, params, *, bm=None):
    """x: (B, D_in) f32. params: list of 10 (W (in, out), b (out,)) f32 tuples."""
    B, D_in = x.shape
    D_out = params[-1][0].shape[1]

    # Lane-dense padding of the narrow bottleneck layers, then flatten the params:
    # bf16 weights for the MXU, f32 (1, out) biases for the f32 epilogue.
    padded = _pad_params_lane_dense(params)
    flat_inputs = []
    for w, b in padded:
        flat_inputs.append(w.astype(jnp.bfloat16))
        flat_inputs.append(b.reshape(1, -1).astype(jnp.float32))

    if bm is None:
        bm = _default_bm()
    bm = max(8, _round_up(min(bm, B), 8))

    out_shape = jax.ShapeDtypeStruct((B, D_out), x.dtype)

    if B <= bm:
        # Small batch: one gridless invocation, everything resident in VMEM.
        return pl.pallas_call(autoencoder_kernel, out_shape=out_shape)(x, *flat_inputs)

    # Large batch: tile over rows; weights/biases are grid-invariant blocks
    # (constant index_map -> fetched once, kept resident across batch tiles).
    in_specs = [pl.BlockSpec((bm, D_in), lambda i: (i, 0))]
    for w, b in padded:
        in_specs.append(pl.BlockSpec(w.shape, lambda i: (0, 0)))            # full weight
        in_specs.append(pl.BlockSpec((1, b.shape[0]), lambda i: (0, 0)))    # full bias
    out_spec = pl.BlockSpec((bm, D_out), lambda i: (i, 0))

    return pl.pallas_call(
        autoencoder_kernel,
        out_shape=out_shape,
        grid_spec=pltpu.PrefetchScalarGridSpec(
            num_scalar_prefetch=0,
            grid=(pl.cdiv(B, bm),),
            in_specs=in_specs,
            out_specs=out_spec,
        ),
        compiler_params=pltpu.CompilerParams(
            dimension_semantics=("parallel",),     # batch tiles shard across TCs (megacore)
        ),
    )(x, *flat_inputs)


# ------------------------------ reference -----------------------------------

def init_params(key, input_dim):
    """PyTorch-Linear-style uniform(-1/sqrt(fan_in), 1/sqrt(fan_in)) init."""
    dims = [input_dim, 512, 256, 128, 64, 32, 64, 128, 256, 512, input_dim]
    params = []
    for fan_in, fan_out in zip(dims[:-1], dims[1:]):
        key, kw, kb = jax.random.split(key, 3)
        bound = 1.0 / jnp.sqrt(fan_in)
        w = jax.random.uniform(kw, (fan_in, fan_out), jnp.float32, -bound, bound)
        b = jax.random.uniform(kb, (fan_out,), jnp.float32, -bound, bound)
        params.append((w, b))
    return params


def reference_forward(x, params):
    """Pure-JAX reference mirroring the kernel's bf16-operand / f32-accumulate math
    (uses the UNPADDED params, so it also validates the lane-padding)."""
    h = x.astype(jnp.float32)
    n = len(params)
    for i, (w, b) in enumerate(params):
        h = jnp.dot(h.astype(jnp.bfloat16), w.astype(jnp.bfloat16),
                    preferred_element_type=jnp.float32) + b
        if i != n - 1:
            h = jnp.maximum(h, 0.0)
    return h


def reference_forward_f32(x, params):
    h = x
    n = len(params)
    for i, (w, b) in enumerate(params):
        h = h @ w + b
        if i != n - 1:
            h = jnp.maximum(h, 0.0)
    return h


if __name__ == "__main__":
    key = jax.random.PRNGKey(0)
    kx, kx2, kp = jax.random.split(key, 3)

    # input_dim = (16, 16) -> 256 flattened features (matches the PyTorch module).
    H, W = 16, 16
    input_dim = H * W
    params = init_params(kp, input_dim)

    # Small-batch case (B=8): exercises the gridless single-invocation path.
    x_small = jax.random.normal(kx, (8, input_dim), jnp.float32)
    out_small = jax.block_until_ready(autoencoder_forward(x_small, params))
    ref_small = reference_forward(x_small, params)
    assert out_small.shape == (8, input_dim)
    assert jnp.allclose(out_small, ref_small, atol=2e-3, rtol=2e-3), "small-batch mismatch"

    # Larger batch, not a multiple of the tile: exercises the batch-tiled grid path
    # (grid = 4, last tile partially masked).
    x_big = jax.random.normal(kx2, (392, input_dim), jnp.float32)
    out_big = jax.block_until_ready(autoencoder_forward(x_big, params, bm=128))
    ref_big = reference_forward(x_big, params)
    assert out_big.shape == (392, input_dim)
    assert jnp.allclose(out_big, ref_big, atol=2e-3, rtol=2e-3), "tiled-batch mismatch"

    # Loose sanity check vs a pure-f32 reference (bounded bf16 matmul error budget).
    assert jnp.allclose(out_small, reference_forward_f32(x_small, params),
                        atol=1e-1, rtol=1e-1), "f32 sanity mismatch"

    print("KERNEL_OK")
</pallas_src>

<mosaic_0001>
module attributes {stable_mosaic.version = 11 : i64} {
  func.func @autoencoder_kernel(%arg0: memref<8x256xf32, #tpu.memory_space<vmem>>, %arg1: memref<256x512xbf16, #tpu.memory_space<vmem>>, %arg2: memref<1x512xf32, #tpu.memory_space<vmem>>, %arg3: memref<512x256xbf16, #tpu.memory_space<vmem>>, %arg4: memref<1x256xf32, #tpu.memory_space<vmem>>, %arg5: memref<256x128xbf16, #tpu.memory_space<vmem>>, %arg6: memref<1x128xf32, #tpu.memory_space<vmem>>, %arg7: memref<128x128xbf16, #tpu.memory_space<vmem>>, %arg8: memref<1x128xf32, #tpu.memory_space<vmem>>, %arg9: memref<128x128xbf16, #tpu.memory_space<vmem>>, %arg10: memref<1x128xf32, #tpu.memory_space<vmem>>, %arg11: memref<128x128xbf16, #tpu.memory_space<vmem>>, %arg12: memref<1x128xf32, #tpu.memory_space<vmem>>, %arg13: memref<128x128xbf16, #tpu.memory_space<vmem>>, %arg14: memref<1x128xf32, #tpu.memory_space<vmem>>, %arg15: memref<128x256xbf16, #tpu.memory_space<vmem>>, %arg16: memref<1x256xf32, #tpu.memory_space<vmem>>, %arg17: memref<256x512xbf16, #tpu.memory_space<vmem>>, %arg18: memref<1x512xf32, #tpu.memory_space<vmem>>, %arg19: memref<512x256xbf16, #tpu.memory_space<vmem>>, %arg20: memref<1x256xf32, #tpu.memory_space<vmem>>, %arg21: memref<8x256xf32, #tpu.memory_space<vmem>>) attributes {dimension_semantics = [], scalar_prefetch = 0 : i64, scratch_operands = 0 : i64, tpu.core_type = #tpu.core_type<tc>} {
    %c0 = arith.constant 0 : index
    %c0_0 = arith.constant 0 : index
    %0 = vector.load %arg0[%c0, %c0_0] : memref<8x256xf32, #tpu.memory_space<vmem>>, vector<8x256xf32>
    %c0_1 = arith.constant 0 : index
    %c0_2 = arith.constant 0 : index
    %1 = vector.load %arg1[%c0_1, %c0_2] : memref<256x512xbf16, #tpu.memory_space<vmem>>, vector<256x512xbf16>
    %c0_3 = arith.constant 0 : index
    %c0_4 = arith.constant 0 : index
    %2 = vector.load %arg2[%c0_3, %c0_4] : memref<1x512xf32, #tpu.memory_space<vmem>>, vector<1x512xf32>
    %3 = arith.truncf %0 : vector<8x256xf32> to vector<8x256xbf16>
    %cst = arith.constant dense<0.000000e+00> : vector<8x512xf32>
    %4 = tpu.matmul %3, %1, %cst {dimension_numbers = #tpu.dot_dimension_numbers<[1], [0], [0], [1], [0, 0, 1, 1], [], []>} : vector<8x256xbf16>, vector<256x512xbf16>, vector<8x512xf32> -> vector<8x512xf32>
    %5 = vector.broadcast %2 : vector<1x512xf32> to vector<8x512xf32>
    %6 = arith.addf %4, %5 : vector<8x512xf32>
    %cst_5 = arith.constant 0.000000e+00 : f32
    %7 = vector.broadcast %cst_5 : f32 to vector<8x512xf32>
    %8 = arith.maximumf %6, %7 : vector<8x512xf32>
    %c0_6 = arith.constant 0 : index
    %c0_7 = arith.constant 0 : index
    %9 = vector.load %arg3[%c0_6, %c0_7] : memref<512x256xbf16, #tpu.memory_space<vmem>>, vector<512x256xbf16>
    %c0_8 = arith.constant 0 : index
    %c0_9 = arith.constant 0 : index
    %10 = vector.load %arg4[%c0_8, %c0_9] : memref<1x256xf32, #tpu.memory_space<vmem>>, vector<1x256xf32>
    %11 = arith.truncf %8 : vector<8x512xf32> to vector<8x512xbf16>
    %cst_10 = arith.constant dense<0.000000e+00> : vector<8x256xf32>
    %12 = tpu.matmul %11, %9, %cst_10 {dimension_numbers = #tpu.dot_dimension_numbers<[1], [0], [0], [1], [0, 0, 1, 1], [], []>} : vector<8x512xbf16>, vector<512x256xbf16>, vector<8x256xf32> -> vector<8x256xf32>
    %13 = vector.broadcast %10 : vector<1x256xf32> to vector<8x256xf32>
    %14 = arith.addf %12, %13 : vector<8x256xf32>
    %cst_11 = arith.constant 0.000000e+00 : f32
    %15 = vector.broadcast %cst_11 : f32 to vector<8x256xf32>
    %16 = arith.maximumf %14, %15 : vector<8x256xf32>
    %c0_12 = arith.constant 0 : index
    %c0_13 = arith.constant 0 : index
    %17 = vector.load %arg5[%c0_12, %c0_13] : memref<256x128xbf16, #tpu.memory_space<vmem>>, vector<256x128xbf16>
    %c0_14 = arith.constant 0 : index
    %c0_15 = arith.constant 0 : index
    %18 = vector.load %arg6[%c0_14, %c0_15] : memref<1x128xf32, #tpu.memory_space<vmem>>, vector<1x128xf32>
    %19 = arith.truncf %16 : vector<8x256xf32> to vector<8x256xbf16>
    %cst_16 = arith.constant dense<0.000000e+00> : vector<8x128xf32>
    %20 = tpu.matmul %19, %17, %cst_16 {dimension_numbers = #tpu.dot_dimension_numbers<[1], [0], [0], [1], [0, 0, 1, 1], [], []>} : vector<8x256xbf16>, vector<256x128xbf16>, vector<8x128xf32> -> vector<8x128xf32>
    %21 = vector.broadcast %18 : vector<1x128xf32> to vector<8x128xf32>
    %22 = arith.addf %20, %21 : vector<8x128xf32>
    %cst_17 = arith.constant 0.000000e+00 : f32
    %23 = vector.broadcast %cst_17 : f32 to vector<8x128xf32>
    %24 = arith.maximumf %22, %23 : vector<8x128xf32>
    %c0_18 = arith.constant 0 : index
    %c0_19 = arith.constant 0 : index
    %25 = vector.load %arg7[%c0_18, %c0_19] : memref<128x128xbf16, #tpu.memory_space<vmem>>, vector<128x128xbf16>
    %c0_20 = arith.constant 0 : index
    %c0_21 = arith.constant 0 : index
    %26 = vector.load %arg8[%c0_20, %c0_21] : memref<1x128xf32, #tpu.memory_space<vmem>>, vector<1x128xf32>
    %27 = arith.truncf %24 : vector<8x128xf32> to vector<8x128xbf16>
    %cst_22 = arith.constant dense<0.000000e+00> : vector<8x128xf32>
    %28 = tpu.matmul %27, %25, %cst_22 {dimension_numbers = #tpu.dot_dimension_numbers<[1], [0], [0], [1], [0, 0, 1, 1], [], []>} : vector<8x128xbf16>, vector<128x128xbf16>, vector<8x128xf32> -> vector<8x128xf32>
    %29 = vector.broadcast %26 : vector<1x128xf32> to vector<8x128xf32>
    %30 = arith.addf %28, %29 : vector<8x128xf32>
    %cst_23 = arith.constant 0.000000e+00 : f32
    %31 = vector.broadcast %cst_23 : f32 to vector<8x128xf32>
    %32 = arith.maximumf %30, %31 : vector<8x128xf32>
    %c0_24 = arith.constant 0 : index
    %c0_25 = arith.constant 0 : index
    %33 = vector.load %arg9[%c0_24, %c0_25] : memref<128x128xbf16, #tpu.memory_space<vmem>>, vector<128x128xbf16>
    %c0_26 = arith.constant 0 : index
    %c0_27 = arith.constant 0 : index
    %34 = vector.load %arg10[%c0_26, %c0_27] : memref<1x128xf32, #tpu.memory_space<vmem>>, vector<1x128xf32>
    %35 = arith.truncf %32 : vector<8x128xf32> to vector<8x128xbf16>
    %cst_28 = arith.constant dense<0.000000e+00> : vector<8x128xf32>
    %36 = tpu.matmul %35, %33, %cst_28 {dimension_numbers = #tpu.dot_dimension_numbers<[1], [0], [0], [1], [0, 0, 1, 1], [], []>} : vector<8x128xbf16>, vector<128x128xbf16>, vector<8x128xf32> -> vector<8x128xf32>
    %37 = vector.broadcast %34 : vector<1x128xf32> to vector<8x128xf32>
    %38 = arith.addf %36, %37 : vector<8x128xf32>
    %cst_29 = arith.constant 0.000000e+00 : f32
    %39 = vector.broadcast %cst_29 : f32 to vector<8x128xf32>
    %40 = arith.maximumf %38, %39 : vector<8x128xf32>
    %c0_30 = arith.constant 0 : index
    %c0_31 = arith.constant 0 : index
    %41 = vector.load %arg11[%c0_30, %c0_31] : memref<128x128xbf16, #tpu.memory_space<vmem>>, vector<128x128xbf16>
    %c0_32 = arith.constant 0 : index
    %c0_33 = arith.constant 0 : index
    %42 = vector.load %arg12[%c0_32, %c0_33] : memref<1x128xf32, #tpu.memory_space<vmem>>, vector<1x128xf32>
    %43 = arith.truncf %40 : vector<8x128xf32> to vector<8x128xbf16>
    %cst_34 = arith.constant dense<0.000000e+00> : vector<8x128xf32>
    %44 = tpu.matmul %43, %41, %cst_34 {dimension_numbers = #tpu.dot_dimension_numbers<[1], [0], [0], [1], [0, 0, 1, 1], [], []>} : vector<8x128xbf16>, vector<128x128xbf16>, vector<8x128xf32> -> vector<8x128xf32>
    %45 = vector.broadcast %42 : vector<1x128xf32> to vector<8x128xf32>
    %46 = arith.addf %44, %45 : vector<8x128xf32>
    %cst_35 = arith.constant 0.000000e+00 : f32
    %47 = vector.broadcast %cst_35 : f32 to vector<8x128xf32>
    %48 = arith.maximumf %46, %47 : vector<8x128xf32>
    %c0_36 = arith.constant 0 : index
    %c0_37 = arith.constant 0 : index
    %49 = vector.load %arg13[%c0_36, %c0_37] : memref<128x128xbf16, #tpu.memory_space<vmem>>, vector<128x128xbf16>
    %c0_38 = arith.constant 0 : index
    %c0_39 = arith.constant 0 : index
    %50 = vector.load %arg14[%c0_38, %c0_39] : memref<1x128xf32, #tpu.memory_space<vmem>>, vector<1x128xf32>
    %51 = arith.truncf %48 : vector<8x128xf32> to vector<8x128xbf16>
    %cst_40 = arith.constant dense<0.000000e+00> : vector<8x128xf32>
    %52 = tpu.matmul %51, %49, %cst_40 {dimension_numbers = #tpu.dot_dimension_numbers<[1], [0], [0], [1], [0, 0, 1, 1], [], []>} : vector<8x128xbf16>, vector<128x128xbf16>, vector<8x128xf32> -> vector<8x128xf32>
    %53 = vector.broadcast %50 : vector<1x128xf32> to vector<8x128xf32>
    %54 = arith.addf %52, %53 : vector<8x128xf32>
    %cst_41 = arith.constant 0.000000e+00 : f32
    %55 = vector.broadcast %cst_41 : f32 to vector<8x128xf32>
    %56 = arith.maximumf %54, %55 : vector<8x128xf32>
    %c0_42 = arith.constant 0 : index
    %c0_43 = arith.constant 0 : index
    %57 = vector.load %arg15[%c0_42, %c0_43] : memref<128x256xbf16, #tpu.memory_space<vmem>>, vector<128x256xbf16>
    %c0_44 = arith.constant 0 : index
    %c0_45 = arith.constant 0 : index
    %58 = vector.load %arg16[%c0_44, %c0_45] : memref<1x256xf32, #tpu.memory_space<vmem>>, vector<1x256xf32>
    %59 = arith.truncf %56 : vector<8x128xf32> to vector<8x128xbf16>
    %cst_46 = arith.constant dense<0.000000e+00> : vector<8x256xf32>
    %60 = tpu.matmul %59, %57, %cst_46 {dimension_numbers = #tpu.dot_dimension_numbers<[1], [0], [0], [1], [0, 0, 1, 1], [], []>} : vector<8x128xbf16>, vector<128x256xbf16>, vector<8x256xf32> -> vector<8x256xf32>
    %61 = vector.broadcast %58 : vector<1x256xf32> to vector<8x256xf32>
    %62 = arith.addf %60, %61 : vector<8x256xf32>
    %cst_47 = arith.constant 0.000000e+00 : f32
    %63 = vector.broadcast %cst_47 : f32 to vector<8x256xf32>
    %64 = arith.maximumf %62, %63 : vector<8x256xf32>
    %c0_48 = arith.constant 0 : index
    %c0_49 = arith.constant 0 : index
    %65 = vector.load %arg17[%c0_48, %c0_49] : memref<256x512xbf16, #tpu.memory_space<vmem>>, vector<256x512xbf16>
    %c0_50 = arith.constant 0 : index
    %c0_51 = arith.constant 0 : index
    %66 = vector.load %arg18[%c0_50, %c0_51] : memref<1x512xf32, #tpu.memory_space<vmem>>, vector<1x512xf32>
    %67 = arith.truncf %64 : vector<8x256xf32> to vector<8x256xbf16>
    %cst_52 = arith.constant dense<0.000000e+00> : vector<8x512xf32>
    %68 = tpu.matmul %67, %65, %cst_52 {dimension_numbers = #tpu.dot_dimension_numbers<[1], [0], [0], [1], [0, 0, 1, 1], [], []>} : vector<8x256xbf16>, vector<256x512xbf16>, vector<8x512xf32> -> vector<8x512xf32>
    %69 = vector.broadcast %66 : vector<1x512xf32> to vector<8x512xf32>
    %70 = arith.addf %68, %69 : vector<8x512xf32>
    %cst_53 = arith.constant 0.000000e+00 : f32
    %71 = vector.broadcast %cst_53 : f32 to vector<8x512xf32>
    %72 = arith.maximumf %70, %71 : vector<8x512xf32>
    %c0_54 = arith.constant 0 : index
    %c0_55 = arith.constant 0 : index
    %73 = vector.load %arg19[%c0_54, %c0_55] : memref<512x256xbf16, #tpu.memory_space<vmem>>, vector<512x256xbf16>
    %c0_56 = arith.constant 0 : index
    %c0_57 = arith.constant 0 : index
    %74 = vector.load %arg20[%c0_56, %c0_57] : memref<1x256xf32, #tpu.memory_space<vmem>>, vector<1x256xf32>
    %75 = arith.truncf %72 : vector<8x512xf32> to vector<8x512xbf16>
    %cst_58 = arith.constant dense<0.000000e+00> : vector<8x256xf32>
    %76 = tpu.matmul %75, %73, %cst_58 {dimension_numbers = #tpu.dot_dimension_numbers<[1], [0], [0], [1], [0, 0, 1, 1], [], []>} : vector<8x512xbf16>, vector<512x256xbf16>, vector<8x256xf32> -> vector<8x256xf32>
    %77 = vector.broadcast %74 : vector<1x256xf32> to vector<8x256xf32>
    %78 = arith.addf %76, %77 : vector<8x256xf32>
    %c0_59 = arith.constant 0 : index
    %c0_60 = arith.constant 0 : index
    %79 = vector.load %arg21[%c0_59, %c0_60] : memref<8x256xf32, #tpu.memory_space<vmem>>, vector<8x256xf32>
    tpu.vector_store %arg21[%c0_59, %c0_60], %78 {strides = array<i32>} : memref<8x256xf32, #tpu.memory_space<vmem>>, vector<8x256xf32>,
    return
  }
}

</mosaic_0001>

<bundles_post_ra>
// kernel: tpu_custom_call.1
= control target key start
LH: loop header
LB: loop body
LE: loop exit
PB: predicated region body
PF: predicated region fallthrough
CT: control target
= control target key end

     0   :  { %s4640_s0 = inlined_call_operand.hbm [shape: f32[8,256], index: 0, kind: input, shape index: {}]   ;;  %s4641_s1 = inlined_call_operand.hbm [shape: bf16[256,512], index: 1, kind: input, shape index: {}]   ;;  %s4642_s2 = inlined_call_operand.vmem [shape: f32[1,512], index: 2, kind: input, shape index: {}]   ;;  %s4643_s3 = inlined_call_operand.hbm [shape: bf16[512,256], index: 3, kind: input, shape index: {}]   ;;  %s4644_s4 = inlined_call_operand.vmem [shape: f32[1,256], index: 4, kind: input, shape index: {}]   ;;  %s4645_s5 = inlined_call_operand.hbm [shape: bf16[256,128], index: 5, kind: input, shape index: {}]   ;;  %s4646_s6 = inlined_call_operand.vmem [shape: f32[1,128], index: 6, kind: input, shape index: {}]   ;;  %s4647_s7 = inlined_call_operand.hbm [shape: bf16[128,128], index: 7, kind: input, shape index: {}]   ;;  %s4648_s8 = inlined_call_operand.vmem [shape: f32[1,128], index: 8, kind: input, shape index: {}]   ;;  %s4649_s9 = inlined_call_operand.hbm [shape: bf16[128,128], index: 9, kind: input, shape index: {}]   ;;  %s4650_s10 = inlined_call_operand.vmem [shape: f32[1,128], index: 10, kind: input, shape index: {}]   ;;  %s4651_s11 = inlined_call_operand.hbm [shape: bf16[128,128], index: 11, kind: input, shape index: {}]   ;;  %s4652_s12 = inlined_call_operand.vmem [shape: f32[1,128], index: 12, kind: input, shape index: {}]   ;;  %s4653_s13 = inlined_call_operand.hbm [shape: bf16[128,128], index: 13, kind: input, shape index: {}]   ;;  %s4654_s14 = inlined_call_operand.vmem [shape: f32[1,128], index: 14, kind: input, shape index: {}]   ;;  %s4655_s15 = inlined_call_operand.hbm [shape: bf16[128,256], index: 15, kind: input, shape index: {}]   ;;  %s4656_s16 = inlined_call_operand.vmem [shape: f32[1,256], index: 16, kind: input, shape index: {}]   ;;  %s4657_s17 = inlined_call_operand.hbm [shape: bf16[256,512], index: 17, kind: input, shape index: {}]   ;;  %s4658_s18 = inlined_call_operand.vmem [shape: f32[1,512], index: 18, kind: input, shape index: {}]   ;;  %s4659_s19 = inlined_call_operand.hbm [shape: bf16[512,256], index: 19, kind: input, shape index: {}]   ;;  %s4660_s20 = inlined_call_operand.vmem [shape: f32[1,256], index: 20, kind: input, shape index: {}]   ;;  %s4661_s21 = inlined_call_operand.hbm [shape: f32[8,256], index: 21, kind: output, shape index: {}]  }
   0x1   :  { %4669 = sst [smem:[#allocation28_spill]] %s4640_s0 }
   0x2   :  { %4670 = sst [smem:[#allocation29_spill]] %s4641_s1 }
   0x3   :  { %4671 = sst [smem:[#allocation30_spill]] %s4642_s2 }
   0x4   :  { %4672 = sst [smem:[#allocation31_spill]] %s4643_s3 }
   0x5   :  { %4673 = sst [smem:[#allocation32_spill]] %s4644_s4 }
   0x6   :  { %4674 = sst [smem:[#allocation33_spill]] %s4645_s5 }
   0x7   :  { %4675 = sst [smem:[#allocation34_spill]] %s4660_s20 }
   0x8   :  { %4676 = sst [smem:[#allocation35_spill]] %s4661_s21 }
   0x9   :  { %26 = vsyncpa [#allocation3], 0 }
   0xa   :  { %27 = vsyncpa [#allocation6], 0 }
   0xb   :  { %28 = vsyncpa [#allocation9], 0 }
   0xc   :  { %29 = vsyncpa [#allocation12], 0 }
   0xd   :  { %30 = vsyncpa [#allocation15], 0 }
   0xe   :  { %31 = vsyncpa [#allocation18], 0 }
   0xf   :  { %32 = vsyncpa [#allocation4], 0  ;;  %s4207_s2 = smov [#allocation5]   ;;  %s4677_s3 = sld [smem:[#allocation29_spill]] }
  0x10   :  { %s48_s25 = sshll.u32 %s4207_s2, 4  ;;  %s49_s25 = int_to_ptr.vmem [resolvable:$true] %s48_s25 }
  0x15   :  { %s3929_s28 = scalar_lea.hbm %s4677_s3, 8192 }
  0x16   :  { %p3930_p0 = scmp.ne.s32.totalorder %s4677_s3, %s3929_s28  ;;  %p3933_p1 = scmp.lt.u32.totalorder %s3929_s28, %s4677_s3 }
  0x18   :  { %p3935_p2 = pnand %p3933_p1, %p3930_p0 }
  0x1a   :  { %3938 = shalt.err (!%p3935_p2)
}
  0x1b   :  { %s3939_s5 = scalar_lea.vmem %s49_s25, 8192  ;;  %p3944_p4 = scmp.lt.s32.totalorder %s49_s25, %s49_s25 }
  0x1c   :  { %p3940_p3 = scmp.ne.s32.totalorder %s49_s25, %s3939_s5  ;;  %p3945_p5 = scmp.lt.s32.totalorder %s3939_s5, %s3939_s5 }
  0x1e   :  { %p3946_p6 = por %p3945_p5, %p3944_p4 }
  0x20   :  { %p3947_p7 = pnand %p3946_p6, %p3940_p3 }
  0x22   :  { %3950 = shalt.err (!%p3947_p7)
}
  0x23   :  { %s4667_s22 = smov 256   ;;  %s4668_s23 = smov 16  }
  0x24   :  { %54 = dma.hbm_to_vmem [thread:$0]  %s4677_s3, 8192, %s49_s25, [#allocation6], %s4667_s22, %s4667_s22, %s4668_s23  }
  0x25   :  { %s4210_s2 = smov [#allocation8]   ;;  %s4678_s29 = sld [smem:[#allocation33_spill]] }
  0x26   :  { %s76_s26 = sshll.u32 %s4210_s2, 4  ;;  %s77_s26 = int_to_ptr.vmem [resolvable:$true] %s76_s26 }
  0x2b   :  { %s3951_s0 = scalar_lea.hbm %s4678_s29, 2048 }
  0x2c   :  { %p3952_p8 = scmp.ne.s32.totalorder %s4678_s29, %s3951_s0  ;;  %p3955_p9 = scmp.lt.u32.totalorder %s3951_s0, %s4678_s29 }
  0x2e   :  { %p3957_p10 = pnand %p3955_p9, %p3952_p8 }
  0x30   :  { %3960 = shalt.err (!%p3957_p10)
}
  0x31   :  { %s3961_s20 = scalar_lea.vmem %s77_s26, 2048  ;;  %p3966_p12 = scmp.lt.s32.totalorder %s77_s26, %s77_s26 }
  0x32   :  { %p3962_p11 = scmp.ne.s32.totalorder %s77_s26, %s3961_s20  ;;  %p3967_p13 = scmp.lt.s32.totalorder %s3961_s20, %s3961_s20 }
  0x34   :  { %p3968_p0 = por %p3967_p13, %p3966_p12 }
  0x36   :  { %p3969_p1 = pnand %p3968_p0, %p3962_p11 }
  0x38   :  { %3972 = shalt.err (!%p3969_p1)
}
  0x39   :  { %s4211_s25 = smov 64   ;;  %s4212_s3 = smov 4  }
  0x3a   :  { %82 = dma.hbm_to_vmem [thread:$0]  %s4678_s29, 2048, %s77_s26, [#allocation9], %s4211_s25, %s4211_s25, %s4212_s3  }
  0x3b   :  { %s4213_s21 = smov [#allocation11]   ;;  %s4214_s27 = smov [#allocation14]  }
  0x3c   :  { %s104_s2 = sshll.u32 %s4213_s21, 4  ;;  %s132_s28 = sshll.u32 %s4214_s27, 4  ;;  %s105_s2 = int_to_ptr.vmem [resolvable:$true] %s104_s2  ;;  %s4368_s28 = int_to_ptr.vmem [resolvable:$true] %s132_s28 }
  0x3d   :  { %s3973_s4 = scalar_lea.hbm %s4649_s9, 1024 }
  0x3e   :  { %p3974_p2 = scmp.ne.s32.totalorder %s4649_s9, %s3973_s4  ;;  %p3977_p3 = scmp.lt.u32.totalorder %s3973_s4, %s4649_s9 }
  0x40   :  { %p3979_p4 = pnand %p3977_p3, %p3974_p2 }
  0x42   :  { %3982 = shalt.err (!%p3979_p4)
}
  0x43   :  { %s3983_s26 = scalar_lea.vmem %s105_s2, 1024  ;;  %p3988_p6 = scmp.lt.s32.totalorder %s105_s2, %s105_s2 }
  0x44   :  { %p3984_p5 = scmp.ne.s32.totalorder %s105_s2, %s3983_s26  ;;  %p3989_p7 = scmp.lt.s32.totalorder %s3983_s26, %s3983_s26 }
  0x46   :  { %p3990_p8 = por %p3989_p7, %p3988_p6 }
  0x48   :  { %p3991_p9 = pnand %p3990_p8, %p3984_p5 }
  0x4a   :  { %3994 = shalt.err (!%p3991_p9)
}
  0x4b   :  { %110 = dma.hbm_to_vmem [thread:$0]  %s4649_s9, 1024, %s105_s2, [#allocation12], %s4211_s25, %s4211_s25, %s4212_s3  }
  0x4c   :  { %s3995_s22 = scalar_lea.hbm %s4653_s13, 1024 }
  0x4d   :  { %p3996_p10 = scmp.ne.s32.totalorder %s4653_s13, %s3995_s22  ;;  %p3999_p11 = scmp.lt.u32.totalorder %s3995_s22, %s4653_s13 }
  0x4f   :  { %p4001_p12 = pnand %p3999_p11, %p3996_p10 }
  0x51   :  { %4004 = shalt.err (!%p4001_p12)
}
  0x52   :  { %s4005_s4 = scalar_lea.vmem %s4368_s28, 1024  ;;  %p4010_p0 = scmp.lt.s32.totalorder %s4368_s28, %s4368_s28 }
  0x53   :  { %p4006_p13 = scmp.ne.s32.totalorder %s4368_s28, %s4005_s4  ;;  %p4011_p1 = scmp.lt.s32.totalorder %s4005_s4, %s4005_s4 }
  0x55   :  { %p4012_p2 = por %p4011_p1, %p4010_p0 }
  0x57   :  { %p4013_p3 = pnand %p4012_p2, %p4006_p13 }
  0x59   :  { %4016 = shalt.err (!%p4013_p3)
}
  0x5a   :  { %138 = dma.hbm_to_vmem [thread:$0]  %s4653_s13, 1024, %s4368_s28, [#allocation15], %s4211_s25, %s4211_s25, %s4212_s3  }
  0x5b   :  { %s4215_s30 = smov [#allocation17]   ;;  %s4216_s26 = smov [#allocation2]  }
  0x5c   :  { %s160_s5 = sshll.u32 %s4215_s30, 4  ;;  %s39_s29 = sshll.u32 %s4216_s26, 4  ;;  %s161_s5 = int_to_ptr.vmem [resolvable:$true] %s160_s5  ;;  %s40_s29 = int_to_ptr.vmem [resolvable:$true] %s39_s29 }
  0x5d   :  { %s4017_s21 = scalar_lea.hbm %s4657_s17, 8192 }
  0x5e   :  { %p4018_p4 = scmp.ne.s32.totalorder %s4657_s17, %s4017_s21  ;;  %p4021_p5 = scmp.lt.u32.totalorder %s4017_s21, %s4657_s17 }
  0x60   :  { %p4023_p6 = pnand %p4021_p5, %p4018_p4 }
  0x62   :  { %4026 = shalt.err (!%p4023_p6)
}
  0x63   :  { %s4027_s13 = scalar_lea.vmem %s161_s5, 8192  ;;  %p4032_p8 = scmp.lt.s32.totalorder %s161_s5, %s161_s5 }
  0x64   :  { %p4028_p7 = scmp.ne.s32.totalorder %s161_s5, %s4027_s13  ;;  %p4033_p9 = scmp.lt.s32.totalorder %s4027_s13, %s4027_s13 }
  0x66   :  { %p4034_p10 = por %p4033_p9, %p4032_p8 }
  0x68   :  { %p4035_p11 = pnand %p4034_p10, %p4028_p7 }
  0x6a   :  { %4038 = shalt.err (!%p4035_p11)
}
  0x6b   :  { %s4679_s28 = smov 16   ;;  %s4680_s0 = smov 256  }
  0x6c   :  { %166 = dma.hbm_to_vmem [thread:$0]  %s4657_s17, 8192, %s161_s5, [#allocation18], %s4680_s0, %s4680_s0, %s4679_s28  }
  0x6d   :  { %s4681_s26 = sld [smem:[#allocation28_spill]] }
  0x73   :  { %s4039_s1 = scalar_lea.hbm %s4681_s26, 256 }
  0x74   :  { %p4040_p12 = scmp.ne.s32.totalorder %s4681_s26, %s4039_s1  ;;  %p4043_p13 = scmp.lt.u32.totalorder %s4039_s1, %s4681_s26 }
  0x76   :  { %p4045_p0 = pnand %p4043_p13, %p4040_p12 }
  0x78   :  { %4048 = shalt.err (!%p4045_p0)
}
  0x79   :  { %s4049_s27 = scalar_lea.vmem %s40_s29, 256  ;;  %p4054_p2 = scmp.lt.s32.totalorder %s40_s29, %s40_s29 }
  0x7a   :  { %p4050_p1 = scmp.ne.s32.totalorder %s40_s29, %s4049_s27  ;;  %p4055_p3 = scmp.lt.s32.totalorder %s4049_s27, %s4049_s27 }
  0x7c   :  { %p4056_p4 = por %p4055_p3, %p4054_p2 }
  0x7e   :  { %p4057_p5 = pnand %p4056_p4, %p4050_p1 }
  0x80   :  { %4060 = shalt.err (!%p4057_p5)
}
  0x81   :  { %42 = dma.hbm_to_vmem [thread:$0]  %s4681_s26, 256, %s40_s29, [#allocation3]  }
  0x82   :  { %s4217_s20 = smov [#allocation7]   ;;  %s4682_s4 = sld [smem:[#allocation31_spill]] }
  0x83   :  { %s62_s13 = sshll.u32 %s4217_s20, 4  ;;  %s63_s13 = int_to_ptr.vmem [resolvable:$true] %s62_s13 }
  0x88   :  { %s4061_s9 = scalar_lea.hbm %s4682_s4, 8192 }
  0x89   :  { %p4062_p6 = scmp.ne.s32.totalorder %s4682_s4, %s4061_s9  ;;  %p4065_p7 = scmp.lt.u32.totalorder %s4061_s9, %s4682_s4 }
  0x8b   :  { %p4067_p8 = pnand %p4065_p7, %p4062_p6 }
  0x8d   :  { %4070 = shalt.err (!%p4067_p8)
}
  0x8e   :  { %s4071_s21 = scalar_lea.vmem %s63_s13, 8192  ;;  %p4076_p10 = scmp.lt.s32.totalorder %s63_s13, %s63_s13 }
  0x8f   :  { %p4072_p9 = scmp.ne.s32.totalorder %s63_s13, %s4071_s21  ;;  %p4077_p11 = scmp.lt.s32.totalorder %s4071_s21, %s4071_s21 }
  0x91   :  { %p4078_p12 = por %p4077_p11, %p4076_p10 }
  0x93   :  { %p4079_p13 = pnand %p4078_p12, %p4072_p9 }
  0x95   :  { %4082 = shalt.err (!%p4079_p13)
}
  0x96   :  { %s4218_s29 = smov 128   ;;  %s4219_s26 = smov 8  }
  0x97   :  { %68 = dma.hbm_to_vmem [thread:$0]  %s4682_s4, 8192, %s63_s13, [#allocation6], %s4218_s29, %s4218_s29, %s4219_s26  }
  0x98   :  { %s4220_s27 = smov [#allocation10]   ;;  %s4221_s5 = smov [#allocation13]  }
  0x99   :  { %s90_s17 = sshll.u32 %s4220_s27, 4  ;;  %s118_s20 = sshll.u32 %s4221_s5, 4  ;;  %s91_s17 = int_to_ptr.vmem [resolvable:$true] %s90_s17  ;;  %s119_s20 = int_to_ptr.vmem [resolvable:$true] %s118_s20 }
  0x9a   :  { %s4083_s9 = scalar_lea.hbm %s4647_s7, 1024 }
  0x9b   :  { %p4084_p0 = scmp.ne.s32.totalorder %s4647_s7, %s4083_s9  ;;  %p4087_p1 = scmp.lt.u32.totalorder %s4083_s9, %s4647_s7 }
  0x9d   :  { %p4089_p2 = pnand %p4087_p1, %p4084_p0 }
  0x9f   :  { %4092 = shalt.err (!%p4089_p2)
}
  0xa0   :  { %s4093_s13 = scalar_lea.vmem %s91_s17, 1024  ;;  %p4098_p4 = scmp.lt.s32.totalorder %s91_s17, %s91_s17 }
  0xa1   :  { %p4094_p3 = scmp.ne.s32.totalorder %s91_s17, %s4093_s13  ;;  %p4099_p5 = scmp.lt.s32.totalorder %s4093_s13, %s4093_s13 }
  0xa3   :  { %p4100_p6 = por %p4099_p5, %p4098_p4 }
  0xa5   :  { %p4101_p7 = pnand %p4100_p6, %p4094_p3 }
  0xa7   :  { %4104 = shalt.err (!%p4101_p7)
}
  0xa8   :  { %96 = dma.hbm_to_vmem [thread:$0]  %s4647_s7, 1024, %s91_s17, [#allocation9], %s4211_s25, %s4211_s25, %s4212_s3  }
  0xa9   :  { %s4105_s27 = scalar_lea.hbm %s4651_s11, 1024 }
  0xaa   :  { %p4106_p8 = scmp.ne.s32.totalorder %s4651_s11, %s4105_s27  ;;  %p4109_p9 = scmp.lt.u32.totalorder %s4105_s27, %s4651_s11 }
  0xac   :  { %p4111_p10 = pnand %p4109_p9, %p4106_p8 }
  0xae   :  { %4114 = shalt.err (!%p4111_p10)
}
  0xaf   :  { %s4115_s2 = scalar_lea.vmem %s119_s20, 1024  ;;  %p4120_p12 = scmp.lt.s32.totalorder %s119_s20, %s119_s20 }
  0xb0   :  { %p4116_p11 = scmp.ne.s32.totalorder %s119_s20, %s4115_s2  ;;  %p4121_p13 = scmp.lt.s32.totalorder %s4115_s2, %s4115_s2 }
  0xb2   :  { %p4122_p0 = por %p4121_p13, %p4120_p12 }
  0xb4   :  { %p4123_p1 = pnand %p4122_p0, %p4116_p11 }
  0xb6   :  { %4126 = shalt.err (!%p4123_p1)
}
  0xb7   :  { %124 = dma.hbm_to_vmem [thread:$0]  %s4651_s11, 1024, %s119_s20, [#allocation12], %s4211_s25, %s4211_s25, %s4212_s3  }
  0xb8   :  { %s4222_s30 = smov [#allocation16]   ;;  %s4223_s24 = smov [#allocation19]  }
  0xb9   :  { %s146_s1 = sshll.u32 %s4222_s30, 4  ;;  %s174_s13 = sshll.u32 %s4223_s24, 4  ;;  %s147_s1 = int_to_ptr.vmem [resolvable:$true] %s146_s1  ;;  %s175_s13 = int_to_ptr.vmem [resolvable:$true] %s174_s13 }
  0xba   :  { %s4127_s22 = scalar_lea.hbm %s4655_s15, 2048 }
  0xbb   :  { %p4128_p2 = scmp.ne.s32.totalorder %s4655_s15, %s4127_s22  ;;  %p4131_p3 = scmp.lt.u32.totalorder %s4127_s22, %s4655_s15 }
  0xbd   :  { %p4133_p4 = pnand %p4131_p3, %p4128_p2 }
  0xbf   :  { %4136 = shalt.err (!%p4133_p4)
}
  0xc0   :  { %s4137_s11 = scalar_lea.vmem %s147_s1, 2048  ;;  %p4142_p6 = scmp.lt.s32.totalorder %s147_s1, %s147_s1 }
  0xc1   :  { %p4138_p5 = scmp.ne.s32.totalorder %s147_s1, %s4137_s11  ;;  %p4143_p7 = scmp.lt.s32.totalorder %s4137_s11, %s4137_s11 }
  0xc3   :  { %p4144_p8 = por %p4143_p7, %p4142_p6 }
  0xc5   :  { %p4145_p9 = pnand %p4144_p8, %p4138_p5 }
  0xc7   :  { %4148 = shalt.err (!%p4145_p9)
}
  0xc8   :  { %152 = dma.hbm_to_vmem [thread:$0]  %s4655_s15, 2048, %s147_s1, [#allocation15], %s4218_s29, %s4218_s29, %s4219_s26  }
  0xc9   :  { %s4149_s9 = scalar_lea.hbm %s4659_s19, 8192 }
  0xca   :  { %p4150_p10 = scmp.ne.s32.totalorder %s4659_s19, %s4149_s9  ;;  %p4153_p11 = scmp.lt.u32.totalorder %s4149_s9, %s4659_s19 }
  0xcc   :  { %p4155_p12 = pnand %p4153_p11, %p4150_p10 }
  0xce   :  { %4158 = shalt.err (!%p4155_p12)
}
  0xcf   :  { %s4159_s24 = scalar_lea.vmem %s175_s13, 8192  ;;  %p4164_p0 = scmp.lt.s32.totalorder %s175_s13, %s175_s13 }
  0xd0   :  { %p4160_p13 = scmp.ne.s32.totalorder %s175_s13, %s4159_s24  ;;  %p4165_p1 = scmp.lt.s32.totalorder %s4159_s24, %s4159_s24 }
  0xd2   :  { %p4166_p2 = por %p4165_p1, %p4164_p0 }
  0xd4   :  { %p4167_p3 = pnand %p4166_p2, %p4160_p13 }
  0xd6   :  { %4170 = shalt.err (!%p4167_p3)
}
  0xd7   :  { %180 = dma.hbm_to_vmem [thread:$0]  %s4659_s19, 8192, %s175_s13, [#allocation18], %s4218_s29, %s4218_s29, %s4219_s26  }
  0xd8   :  { %4193 = dma.done.wait [#allocation3], 256  }
  0xd9   :  { %4194 = vsyncadd [#allocation3], 4294967040 }
  0xda   :  { %4195 = dma.done.wait [#allocation6], 16384  }
  0xdb   :  { %4196 = vsyncadd [#allocation6], 4294950912 }
  0xdc   :  { %4197 = dma.done.wait [#allocation9], 3072  }
  0xdd   :  { %4198 = vsyncadd [#allocation9], 4294964224 }
  0xde   :  { %4199 = dma.done.wait [#allocation12], 2048  }
  0xdf   :  { %4200 = vsyncadd [#allocation12], 4294965248 }
  0xe0   :  { %4201 = dma.done.wait [#allocation15], 3072  }
  0xe1   :  { %4202 = vsyncadd [#allocation15], 4294964224 }
  0xe2   :  { %4203 = dma.done.wait [#allocation18], 16384  }
  0xe3   :  { %4204 = vsyncadd [#allocation18], 4294950912  ;;  %v3473_v0 = vld [vmem:[#allocation5 + $0x4] ss:$16 sps:$4 sm:$0xff]   ;;  %v3475_v1 = vld [vmem:[#allocation5] ss:$16 sps:$4 sm:$0xff]  }
  0xe4   :  { %627 = vmatprep.subr.bf16.mxu1 %v3473_v0  ;;  %v3476_v2 = vld [vmem:[#allocation5 + $0x24] ss:$16 sps:$4 sm:$0xff]   ;;  %v3478_v3 = vld [vmem:[#allocation5 + $0x20] ss:$16 sps:$4 sm:$0xff]   ;;  %v218_v13 = vld [vmem:[#allocation2 + $0x8] sm:$0xff]  ;;  %s4683_s26 = sld [smem:[#allocation30_spill]] }
  0xe5   :  { %628 = vmatpush1.bf16.msra.mxu1 %v3475_v1  ;;  %v3479_v4 = vld [vmem:[#allocation5 + $0x44] ss:$16 sps:$4 sm:$0xff]   ;;  %v3481_v5 = vld [vmem:[#allocation5 + $0x40] ss:$16 sps:$4 sm:$0xff]   ;;  %v4507_v14 = vpack.c.bf16 %v218_v13, %v218_v13  ;;  %v3523_v45 = vld [vmem:[#allocation5 + $0xc] ss:$16 sps:$4 sm:$0xff]  }
  0xe6   :  { %629 = vmatprep.subr.bf16.mxu1 %v3476_v2  ;;  %v3482_v6 = vld [vmem:[#allocation5 + $0x64] ss:$16 sps:$4 sm:$0xff]   ;;  %v3484_v7 = vld [vmem:[#allocation5 + $0x60] ss:$16 sps:$4 sm:$0xff]   ;;  %v3521_v47 = vld [vmem:[#allocation5 + $0x8] ss:$16 sps:$4 sm:$0xff]  }
  0xe7   :  { %v3485_v8 = vld [vmem:[#allocation5 + $0x84] ss:$16 sps:$4 sm:$0xff]   ;;  %v3487_v9 = vld [vmem:[#allocation5 + $0x80] ss:$16 sps:$4 sm:$0xff]   ;;  %659 = vmatprep.mubr.bf16.mxu1 %v4507_v14  ;;  %v3526_v49 = vld [vmem:[#allocation5 + $0x2c] ss:$16 sps:$4 sm:$0xff]  }
  0xe8   :  { %v3488_v10 = vld [vmem:[#allocation5 + $0xa4] ss:$16 sps:$4 sm:$0xff]   ;;  %v3490_v11 = vld [vmem:[#allocation5 + $0xa0] ss:$16 sps:$4 sm:$0xff]   ;;  %v3524_v52 = vld [vmem:[#allocation5 + $0x28] ss:$16 sps:$4 sm:$0xff]  }
  0xe9   :  { %630 = vmatpush1.bf16.msra.mxu1 %v3478_v3  ;;  %v3491_v12 = vld [vmem:[#allocation5 + $0xc4] ss:$16 sps:$4 sm:$0xff]   ;;  %v3493_v15 = vld [vmem:[#allocation5 + $0xc0] ss:$16 sps:$4 sm:$0xff]   ;;  %v3529_v53 = vld [vmem:[#allocation5 + $0x4c] ss:$16 sps:$4 sm:$0xff]  }
  0xea   :  { %631 = vmatprep.subr.bf16.mxu1 %v3479_v4  ;;  %v3494_v16 = vld [vmem:[#allocation5 + $0xe4] ss:$16 sps:$4 sm:$0xff]   ;;  %v3496_v17 = vld [vmem:[#allocation5 + $0xe0] ss:$16 sps:$4 sm:$0xff]   ;;  %v3527_v56 = vld [vmem:[#allocation5 + $0x48] ss:$16 sps:$4 sm:$0xff]  }
  0xeb   :  { %v3497_v18 = vld [vmem:[#allocation5 + $0x104] ss:$16 sps:$4 sm:$0xff]   ;;  %v3499_v19 = vld [vmem:[#allocation5 + $0x100] ss:$16 sps:$4 sm:$0xff]   ;;  %v3532_v57 = vld [vmem:[#allocation5 + $0x6c] ss:$16 sps:$4 sm:$0xff]  }
  0xec   :  { %v3500_v20 = vld [vmem:[#allocation5 + $0x124] ss:$16 sps:$4 sm:$0xff]   ;;  %v3502_v21 = vld [vmem:[#allocation5 + $0x120] ss:$16 sps:$4 sm:$0xff]   ;;  %v3530_v60 = vld [vmem:[#allocation5 + $0x68] ss:$16 sps:$4 sm:$0xff]  }
  0xed   :  { %632 = vmatpush1.bf16.msra.mxu1 %v3481_v5  ;;  %v3503_v22 = vld [vmem:[#allocation5 + $0x144] ss:$16 sps:$4 sm:$0xff]   ;;  %v3505_v23 = vld [vmem:[#allocation5 + $0x140] ss:$16 sps:$4 sm:$0xff]   ;;  %v3535_v61 = vld [vmem:[#allocation5 + $0x8c] ss:$16 sps:$4 sm:$0xff]  }
  0xee   :  { %633 = vmatprep.subr.bf16.mxu1 %v3482_v6  ;;  %v3506_v24 = vld [vmem:[#allocation5 + $0x164] ss:$16 sps:$4 sm:$0xff]   ;;  %v3508_v25 = vld [vmem:[#allocation5 + $0x160] ss:$16 sps:$4 sm:$0xff]   ;;  %v3533_v0 = vld [vmem:[#allocation5 + $0x88] ss:$16 sps:$4 sm:$0xff]  }
  0xef   :  { %v3509_v26 = vld [vmem:[#allocation5 + $0x184] ss:$16 sps:$4 sm:$0xff]   ;;  %v3571_v28 = vld [vmem:[#allocation7] ss:$8 sps:$4 sm:$0xff]   ;;  %v3574_v31 = vld [vmem:[#allocation7 + $0x10] ss:$8 sps:$4 sm:$0xff]  }
  0xf0   :  { %v3569_v27 = vld [vmem:[#allocation7 + $0x4] ss:$8 sps:$4 sm:$0xff]   ;;  %v3572_v29 = vld [vmem:[#allocation7 + $0x14] ss:$8 sps:$4 sm:$0xff]   ;;  %v3511_v30 = vld [vmem:[#allocation5 + $0x180] ss:$16 sps:$4 sm:$0xff]  }
  0xf1   :  { %634 = vmatpush1.bf16.msra.mxu1 %v3484_v7  ;;  %1113 = vmatprep.subr.bf16.mxu0 %v3569_v27  ;;  %v3512_v32 = vld [vmem:[#allocation5 + $0x1a4] ss:$16 sps:$4 sm:$0xff]   ;;  %v3514_v34 = vld [vmem:[#allocation5 + $0x1a0] ss:$16 sps:$4 sm:$0xff]   ;;  %v3538_v1 = vld [vmem:[#allocation5 + $0xac] ss:$16 sps:$4 sm:$0xff]  }
  0xf2   :  { %635 = vmatprep.subr.bf16.mxu1 %v3485_v8  ;;  %1114 = vmatpush1.bf16.msra.mxu0 %v3571_v28  ;;  %v3575_v33 = vld [vmem:[#allocation7 + $0x24] ss:$8 sps:$4 sm:$0xff]   ;;  %v3577_v35 = vld [vmem:[#allocation7 + $0x20] ss:$8 sps:$4 sm:$0xff]   ;;  %v3578_v37 = vld [vmem:[#allocation7 + $0x34] ss:$8 sps:$4 sm:$0xff]  }
  0xf3   :  { %1115 = vmatprep.subr.bf16.mxu0 %v3572_v29  ;;  %v3515_v36 = vld [vmem:[#allocation5 + $0x1c4] ss:$16 sps:$4 sm:$0xff]   ;;  %v3517_v38 = vld [vmem:[#allocation5 + $0x1c0] ss:$16 sps:$4 sm:$0xff]   ;;  %v3536_v4 = vld [vmem:[#allocation5 + $0xa8] ss:$16 sps:$4 sm:$0xff]  }
  0xf4   :  { %v3580_v39 = vld [vmem:[#allocation7 + $0x30] ss:$8 sps:$4 sm:$0xff]   ;;  %v3518_v40 = vld [vmem:[#allocation5 + $0x1e4] ss:$16 sps:$4 sm:$0xff]   ;;  %v3583_v44 = vld [vmem:[#allocation7 + $0x40] ss:$8 sps:$4 sm:$0xff]  }
  0xf5   :  { %636 = vmatpush1.bf16.msra.mxu1 %v3487_v9  ;;  %v3581_v41 = vld [vmem:[#allocation7 + $0x44] ss:$8 sps:$4 sm:$0xff]   ;;  %v3520_v42 = vld [vmem:[#allocation5 + $0x1e0] ss:$16 sps:$4 sm:$0xff]   ;;  %v3584_v46 = vld [vmem:[#allocation7 + $0x54] ss:$8 sps:$4 sm:$0xff]  }
  0xf6   :  { %637 = vmatprep.subr.bf16.mxu1 %v3488_v10  ;;  %1116 = vmatpush1.bf16.msra.mxu0 %v3574_v31  ;;  %v217_v43 = vld [vmem:[#allocation2] sm:$0xff]  ;;  %v3587_v51 = vld [vmem:[#allocation7 + $0x64] ss:$8 sps:$4 sm:$0xff]   ;;  %v3589_v54 = vld [vmem:[#allocation7 + $0x60] ss:$8 sps:$4 sm:$0xff]   ;;  %s4684_s21 = sld [smem:[#allocation32_spill]] }
  0xf7   :  { %1117 = vmatprep.subr.bf16.mxu0 %v3575_v33  ;;  %v4510_v48 = vpack.c.bf16 %v217_v43, %v217_v43  ;;  %v3586_v50 = vld [vmem:[#allocation7 + $0x50] ss:$8 sps:$4 sm:$0xff]   ;;  %v3590_v55 = vld [vmem:[#allocation7 + $0x74] ss:$8 sps:$4 sm:$0xff]   ;;  %v3593_v59 = vld [vmem:[#allocation7 + $0x84] ss:$8 sps:$4 sm:$0xff]  }
  0xf8   :  { %v3592_v58 = vld [vmem:[#allocation7 + $0x70] ss:$8 sps:$4 sm:$0xff]   ;;  %v3595_v62 = vld [vmem:[#allocation7 + $0x80] ss:$8 sps:$4 sm:$0xff]   ;;  %v3596_v63 = vld [vmem:[#allocation7 + $0x94] ss:$8 sps:$4 sm:$0xff]  }
  0xf9   :  { %638 = vmatpush1.bf16.msra.mxu1 %v3490_v11  ;;  %v3598_v2 = vld [vmem:[#allocation7 + $0x90] ss:$8 sps:$4 sm:$0xff]   ;;  %v3599_v3 = vld [vmem:[#allocation7 + $0xa4] ss:$8 sps:$4 sm:$0xff]   ;;  %v3601_v6 = vld [vmem:[#allocation7 + $0xa0] ss:$8 sps:$4 sm:$0xff]  }
  0xfa   :  { %639 = vmatprep.subr.bf16.mxu1 %v3491_v12  ;;  %1118 = vmatpush1.bf16.msra.mxu0 %v3577_v35  ;;  %v3541_v5 = vld [vmem:[#allocation5 + $0xcc] ss:$16 sps:$4 sm:$0xff]   ;;  %v3539_v8 = vld [vmem:[#allocation5 + $0xc8] ss:$16 sps:$4 sm:$0xff]   ;;  %vm4225_vm0 = vmmov 0   ;;  %s4685_s0 = sld [smem:[#allocation34_spill]] }
  0xfb   :  { %1119 = vmatprep.subr.bf16.mxu0 %v3578_v37  ;;  %v3602_v7 = vld [vmem:[#allocation7 + $0xb4] ss:$8 sps:$4 sm:$0xff]   ;;  %v3604_v10 = vld [vmem:[#allocation7 + $0xb0] ss:$8 sps:$4 sm:$0xff]   ;;  %v3605_v11 = vld [vmem:[#allocation7 + $0xc4] ss:$8 sps:$4 sm:$0xff]  }
  0xfc   :  { %v3544_v9 = vld [vmem:[#allocation5 + $0xec] ss:$16 sps:$4 sm:$0xff]   ;;  %v3542_v12 = vld [vmem:[#allocation5 + $0xe8] ss:$16 sps:$4 sm:$0xff]   ;;  %v3665_v37 = vld [vmem:[#allocation8 + $0x40] sm:$0xff]   ;;  %s4227_s9 = smov [#allocation20]  }
  0xfd   :  { %640 = vmatpush1.bf16.msra.mxu1 %v3493_v15  ;;  %v3547_v13 = vld [vmem:[#allocation5 + $0x10c] ss:$16 sps:$4 sm:$0xff]   ;;  %v3560_v27 = vld [vmem:[#allocation5 + $0x1a8] ss:$16 sps:$4 sm:$0xff]   ;;  %s2963_s2 = sshll.u32 %s4227_s9, 4  ;;  %s2964_s2 = int_to_ptr.vmem [resolvable:$true] %s2963_s2 }
  0xfe   :  { %641 = vmatprep.subr.bf16.mxu1 %v3494_v16  ;;  %1120 = vmatpush1.bf16.msra.mxu0 %v3580_v39  ;;  %v3608_v15 = vld [vmem:[#allocation7 + $0xd4] ss:$8 sps:$4 sm:$0xff]   ;;  %v3545_v16 = vld [vmem:[#allocation5 + $0x108] ss:$16 sps:$4 sm:$0xff]   ;;  %s4171_s7 = scalar_lea.vmem %s2964_s2, 256  ;;  %p4176_p5 = scmp.lt.s32.totalorder %s2964_s2, %s2964_s2 }
  0xff   :  { %1121 = vmatprep.subr.bf16.mxu0 %v3581_v41  ;;  %v3565_v28 = vld [vmem:[#allocation5 + $0x1cc] ss:$16 sps:$4 sm:$0xff]   ;;  %v3563_v29 = vld [vmem:[#allocation5 + $0x1c8] ss:$16 sps:$4 sm:$0xff]   ;;  %v3669_v41 = vld [vmem:[#allocation8 + $0x50] sm:$0xff]   ;;  %p4172_p4 = scmp.ne.s32.totalorder %s2964_s2, %s4171_s7  ;;  %p4177_p6 = scmp.lt.s32.totalorder %s4171_s7, %s4171_s7 }
 0x100   :  { %v3566_v31 = vld [vmem:[#allocation5 + $0x1e8] ss:$16 sps:$4 sm:$0xff]  }
 0x101   :  { %642 = vmatpush1.bf16.msra.mxu1 %v3496_v17  ;;  %v3550_v17 = vld [vmem:[#allocation5 + $0x12c] ss:$16 sps:$4 sm:$0xff]   ;;  %v3613_v33 = vld [vmem:[#allocation7 + $0xe0] ss:$8 sps:$4 sm:$0xff]   ;;  %v3616_v35 = vld [vmem:[#allocation7 + $0xf0] ss:$8 sps:$4 sm:$0xff]   ;;  %p4178_p7 = por %p4177_p6, %p4176_p5 }
 0x102   :  { %643 = vmatprep.subr.bf16.mxu1 %v3497_v18  ;;  %1122 = vmatpush1.bf16.msra.mxu0 %v3583_v44  ;;  %v3610_v18 = vld [vmem:[#allocation7 + $0xd0] ss:$8 sps:$4 sm:$0xff]   ;;  %v3667_v39 = vld [vmem:[#allocation8 + $0x48] sm:$0xff]  }
 0x103   :  { %1123 = vmatprep.subr.bf16.mxu0 %v3584_v46  ;;  %v3671_v43 = vld [vmem:[#allocation8 + $0x58] sm:$0xff]   ;;  %v3674_v46 = vld [vmem:[#allocation8 + $0x20] sm:$0xff]   ;;  %p4179_p8 = pnand %p4178_p7, %p4172_p4 }
 0x104   :  { %v3672_v44 = vld [vmem:[#allocation8 + $0x18] sm:$0xff]  }
 0x105   :  { %644 = vmatpush1.bf16.msra.mxu1 %v3499_v19  ;;  %v3548_v19 = vld [vmem:[#allocation5 + $0x128] ss:$16 sps:$4 sm:$0xff]  }
 0x106   :  { %645 = vmatprep.subr.bf16.mxu1 %v3500_v20  ;;  %1124 = vmatpush1.bf16.msra.mxu0 %v3586_v50  ;;  %v3553_v20 = vld [vmem:[#allocation5 + $0x14c] ss:$16 sps:$4 sm:$0xff]  }
 0x107   :  { %1125 = vmatprep.subr.bf16.mxu0 %v3587_v51 }
 0x109   :  { %646 = vmatpush1.bf16.msra.mxu1 %v3502_v21  ;;  %v3551_v21 = vld [vmem:[#allocation5 + $0x148] ss:$16 sps:$4 sm:$0xff]  }
 0x10a   :  { %647 = vmatprep.subr.bf16.mxu1 %v3503_v22  ;;  %1126 = vmatpush1.bf16.msra.mxu0 %v3589_v54  ;;  %v3556_v22 = vld [vmem:[#allocation5 + $0x16c] ss:$16 sps:$4 sm:$0xff]  }
 0x10b   :  { %1127 = vmatprep.subr.bf16.mxu0 %v3590_v55 }
 0x10d   :  { %648 = vmatpush1.bf16.msra.mxu1 %v3505_v23  ;;  %v3554_v23 = vld [vmem:[#allocation5 + $0x168] ss:$16 sps:$4 sm:$0xff]  }
 0x10e   :  { %649 = vmatprep.subr.bf16.mxu1 %v3506_v24  ;;  %1128 = vmatpush1.bf16.msra.mxu0 %v3592_v58  ;;  %v3559_v24 = vld [vmem:[#allocation5 + $0x18c] ss:$16 sps:$4 sm:$0xff]  }
 0x10f   :  { %1129 = vmatprep.subr.bf16.mxu0 %v3593_v59 }
 0x111   :  { %650 = vmatpush1.bf16.msra.mxu1 %v3508_v25  ;;  %v3557_v25 = vld [vmem:[#allocation5 + $0x188] ss:$16 sps:$4 sm:$0xff]  }
 0x112   :  { %651 = vmatprep.subr.bf16.mxu1 %v3509_v26  ;;  %1130 = vmatpush1.bf16.msra.mxu0 %v3595_v62  ;;  %v3562_v26 = vld [vmem:[#allocation5 + $0x1ac] ss:$16 sps:$4 sm:$0xff]  }
 0x113   :  { %1131 = vmatprep.subr.bf16.mxu0 %v3596_v63 }
 0x115   :  { %652 = vmatpush1.bf16.msra.mxu1 %v3511_v30  ;;  %v3568_v30 = vld [vmem:[#allocation5 + $0x1ec] ss:$16 sps:$4 sm:$0xff]  }
 0x116   :  { %653 = vmatprep.subr.bf16.mxu1 %v3512_v32  ;;  %1132 = vmatpush1.bf16.msra.mxu0 %v3598_v2  ;;  %v3611_v32 = vld [vmem:[#allocation7 + $0xe4] ss:$8 sps:$4 sm:$0xff]   ;;  %v3617_v2 = vld [vmem:[#allocation7 + $0x100] ss:$8 sps:$4 sm:$0xff]  }
 0x117   :  { %1133 = vmatprep.subr.bf16.mxu0 %v3599_v3  ;;  %v3622_v3 = vld [vmem:[#allocation7 + $0x114] ss:$8 sps:$4 sm:$0xff]  }
 0x119   :  { %654 = vmatpush1.bf16.msra.mxu1 %v3514_v34  ;;  %v3614_v34 = vld [vmem:[#allocation7 + $0xf4] ss:$8 sps:$4 sm:$0xff]  }
 0x11a   :  { %655 = vmatprep.subr.bf16.mxu1 %v3515_v36  ;;  %1134 = vmatpush1.bf16.msra.mxu0 %v3601_v6  ;;  %v3619_v36 = vld [vmem:[#allocation7 + $0x104] ss:$8 sps:$4 sm:$0xff]   ;;  %v3623_v6 = vld [vmem:[#allocation7 + $0x120] ss:$8 sps:$4 sm:$0xff]  }
 0x11b   :  { %1135 = vmatprep.subr.bf16.mxu0 %v3602_v7  ;;  %v3628_v7 = vld [vmem:[#allocation7 + $0x134] ss:$8 sps:$4 sm:$0xff]  }
 0x11d   :  { %656 = vmatpush1.bf16.msra.mxu1 %v3517_v38  ;;  %v3666_v38 = vld [vmem:[#allocation8] sm:$0xff]  }
 0x11e   :  { %657 = vmatprep.subr.bf16.mxu1 %v3518_v40  ;;  %1136 = vmatpush1.bf16.msra.mxu0 %v3604_v10  ;;  %v3668_v40 = vld [vmem:[#allocation8 + $0x8] sm:$0xff]  }
 0x11f   :  { %1137 = vmatprep.subr.bf16.mxu0 %v3605_v11  ;;  %v3629_v10 = vld [vmem:[#allocation7 + $0x140] ss:$8 sps:$4 sm:$0xff]   ;;  %v3634_v11 = vld [vmem:[#allocation7 + $0x154] ss:$8 sps:$4 sm:$0xff]  }
 0x121   :  { %658 = vmatpush1.bf16.msra.mxu1 %v3520_v42  ;;  %v3670_v42 = vld [vmem:[#allocation8 + $0x10] sm:$0xff]  }
 0x122   :  { %668 = vmatprep.subr.bf16.mxu1 %v3523_v45  ;;  %v3673_v45 = vld [vmem:[#allocation8 + $0x60] sm:$0xff]  }
 0x124   :  { %660 = vmatmul.mubr.bf16.vlgmr.msra.gmra.mrb[0].mxu1 %v4510_v48 }
 0x125   :  { %669 = vmatpush1.bf16.msra.mxu1 %v3521_v47  ;;  %700 = vmatprep.mubr.bf16.mxu1 %v4507_v14  ;;  %v3607_v14 = vld [vmem:[#allocation7 + $0xc0] ss:$8 sps:$4 sm:$0xff]  }
 0x126   :  { %670 = vmatprep.subr.bf16.mxu1 %v3526_v49  ;;  %1138 = vmatpush1.bf16.msra.mxu0 %v3607_v14  ;;  %v3675_v47 = vld [vmem:[#allocation8 + $0x68] sm:$0xff]   ;;  %v287_v49 = vlaneseq }
 0x127   :  { %1139 = vmatprep.subr.bf16.mxu0 %v3608_v15  ;;  %v3635_v14 = vld [vmem:[#allocation7 + $0x160] ss:$8 sps:$4 sm:$0xff]   ;;  %v3640_v15 = vld [vmem:[#allocation7 + $0x174] ss:$8 sps:$4 sm:$0xff]  }
 0x128   :  { %v4515_v50 = vshrl.u32 %v287_v49, 7  ;;  %v3679_v49 = vld [vmem:[#allocation8 + $0x78] sm:$0xff]  }
 0x129   :  { %671 = vmatpush1.bf16.msra.mxu1 %v3524_v52  ;;  %v4523_v52 = vld [vmem:[%s4683_s26] sm:$0xf] }
 0x12a   :  { %672 = vmatprep.subr.bf16.mxu1 %v3529_v53  ;;  %1140 = vmatpush1.bf16.msra.mxu0 %v3610_v18  ;;  %v4518_v51 = vsub.s32 0, %v4515_v50  ;;  %v4526_v53 = vsub.s32 1, %v4515_v50  ;;  %v3641_v18 = vld [vmem:[#allocation7 + $0x180] ss:$8 sps:$4 sm:$0xff]  }
 0x12b   :  { %1141 = vmatprep.subr.bf16.mxu0 %v3611_v32 }
 0x12c   :  { %v290_v54 = vrot.slane %v4523_v52, %v4518_v51  ;;  %v294_v55 = vrot.slane %v4523_v52, %v4526_v53 }
 0x12d   :  { %673 = vmatpush1.bf16.msra.mxu1 %v3527_v56 }
 0x12e   :  { %674 = vmatprep.subr.bf16.mxu1 %v3532_v57  ;;  %1142 = vmatpush1.bf16.msra.mxu0 %v3613_v33 }
 0x12f   :  { %1143 = vmatprep.subr.bf16.mxu0 %v3614_v34  ;;  %v3659_v34 = vld [vmem:[#allocation7 + $0x1e0] ss:$8 sps:$4 sm:$0xff]  }
 0x131   :  { %675 = vmatpush1.bf16.msra.mxu1 %v3530_v60 }
 0x132   :  { %676 = vmatprep.subr.bf16.mxu1 %v3535_v61  ;;  %1144 = vmatpush1.bf16.msra.mxu0 %v3616_v35  ;;  %v3664_v35 = vld [vmem:[#allocation7 + $0x1f4] ss:$8 sps:$4 sm:$0xff]  }
 0x133   :  { %1154 = vmatprep.subr.bf16.mxu0 %v3619_v36 }
 0x135   :  { %677 = vmatpush1.bf16.msra.mxu1 %v3533_v0 }
 0x136   :  { %678 = vmatprep.subr.bf16.mxu1 %v3538_v1 }
 0x139   :  { %679 = vmatpush1.bf16.msra.mxu1 %v3536_v4  ;;  %v3620_v4 = vld [vmem:[#allocation7 + $0x110] ss:$8 sps:$4 sm:$0xff]  }
 0x13a   :  { %680 = vmatprep.subr.bf16.mxu1 %v3541_v5  ;;  %v3625_v5 = vld [vmem:[#allocation7 + $0x124] ss:$8 sps:$4 sm:$0xff]  }
 0x13d   :  { %681 = vmatpush1.bf16.msra.mxu1 %v3539_v8  ;;  %v3626_v8 = vld [vmem:[#allocation7 + $0x130] ss:$8 sps:$4 sm:$0xff]  }
 0x13e   :  { %682 = vmatprep.subr.bf16.mxu1 %v3544_v9  ;;  %v3631_v9 = vld [vmem:[#allocation7 + $0x144] ss:$8 sps:$4 sm:$0xff]  }
 0x141   :  { %683 = vmatpush1.bf16.msra.mxu1 %v3542_v12  ;;  %v3632_v12 = vld [vmem:[#allocation7 + $0x150] ss:$8 sps:$4 sm:$0xff]  }
 0x142   :  { %684 = vmatprep.subr.bf16.mxu1 %v3547_v13  ;;  %v3637_v13 = vld [vmem:[#allocation7 + $0x164] ss:$8 sps:$4 sm:$0xff]  }
 0x145   :  { %685 = vmatpush1.bf16.msra.mxu1 %v3545_v16  ;;  %v3638_v16 = vld [vmem:[#allocation7 + $0x170] ss:$8 sps:$4 sm:$0xff]  }
 0x146   :  { %686 = vmatprep.subr.bf16.mxu1 %v3550_v17  ;;  %v3643_v17 = vld [vmem:[#allocation7 + $0x184] ss:$8 sps:$4 sm:$0xff]  }
 0x149   :  { %687 = vmatpush1.bf16.msra.mxu1 %v3548_v19  ;;  %v3646_v19 = vld [vmem:[#allocation7 + $0x194] ss:$8 sps:$4 sm:$0xff]  }
 0x14a   :  { %688 = vmatprep.subr.bf16.mxu1 %v3553_v20  ;;  %v3644_v20 = vld [vmem:[#allocation7 + $0x190] ss:$8 sps:$4 sm:$0xff]  }
 0x14d   :  { %689 = vmatpush1.bf16.msra.mxu1 %v3551_v21  ;;  %v3649_v21 = vld [vmem:[#allocation7 + $0x1a4] ss:$8 sps:$4 sm:$0xff]  }
 0x14e   :  { %690 = vmatprep.subr.bf16.mxu1 %v3556_v22  ;;  %v3647_v22 = vld [vmem:[#allocation7 + $0x1a0] ss:$8 sps:$4 sm:$0xff]  }
 0x151   :  { %691 = vmatpush1.bf16.msra.mxu1 %v3554_v23  ;;  %v3652_v23 = vld [vmem:[#allocation7 + $0x1b4] ss:$8 sps:$4 sm:$0xff]  }
 0x152   :  { %692 = vmatprep.subr.bf16.mxu1 %v3559_v24  ;;  %v3650_v24 = vld [vmem:[#allocation7 + $0x1b0] ss:$8 sps:$4 sm:$0xff]  }
 0x155   :  { %693 = vmatpush1.bf16.msra.mxu1 %v3557_v25  ;;  %v3655_v25 = vld [vmem:[#allocation7 + $0x1c4] ss:$8 sps:$4 sm:$0xff]  }
 0x156   :  { %694 = vmatprep.subr.bf16.mxu1 %v3562_v26  ;;  %v3653_v26 = vld [vmem:[#allocation7 + $0x1c0] ss:$8 sps:$4 sm:$0xff]  }
 0x159   :  { %695 = vmatpush1.bf16.msra.mxu1 %v3560_v27  ;;  %v3658_v27 = vld [vmem:[#allocation7 + $0x1d4] ss:$8 sps:$4 sm:$0xff]  }
 0x15a   :  { %696 = vmatprep.subr.bf16.mxu1 %v3565_v28  ;;  %v297_v28 = vsub.s32 2, %v4515_v50 }
 0x15c   :  { %v298_v32 = vrot.slane %v4523_v52, %v297_v28 }
 0x15d   :  { %697 = vmatpush1.bf16.msra.mxu1 %v3563_v29  ;;  %v3656_v29 = vld [vmem:[#allocation7 + $0x1d0] ss:$8 sps:$4 sm:$0xff]  }
 0x15e   :  { %698 = vmatprep.subr.bf16.mxu1 %v3568_v30  ;;  %v301_v30 = vsub.s32 3, %v4515_v50  ;;  %v2537_v50 = vld [vmem:[%s4685_s0] sm:$0x3] }
 0x160   :  { %v302_v33 = vrot.slane %v4523_v52, %v301_v30  ;;  %v3680_v52 = vld [vmem:[#allocation8 + $0x38] sm:$0xff]  }
 0x161   :  { %699 = vmatpush1.bf16.msra.mxu1 %v3566_v31  ;;  %v3661_v31 = vld [vmem:[#allocation7 + $0x1e4] ss:$8 sps:$4 sm:$0xff]  }
 0x162   :  { %3302 = vmatprep.subr.bf16.mxu1 %v3665_v37 }
 0x164   :  { %701 = vmatmul.mubr.bf16.vlgmr.msra.gmra.mrb[4].mxu1 %v4510_v48  ;;  %v3676_v48 = vld [vmem:[#allocation8 + $0x28] sm:$0xff]  }
 0x165   :  { %3303 = vmatpush3.bf16.msra.mxu1 %v3666_v38 }
 0x166   :  { %3304 = vmatprep.subr.bf16.mxu1 %v3667_v39 }
 0x169   :  { %3305 = vmatpush3.bf16.msra.mxu1 %v3668_v40 }
 0x16a   :  { %3306 = vmatprep.subr.bf16.mxu1 %v3669_v41  ;;  %v3662_v41 = vld [vmem:[#allocation7 + $0x1f0] ss:$8 sps:$4 sm:$0xff]  }
 0x16d   :  { %3307 = vmatpush3.bf16.msra.mxu1 %v3670_v42 }
 0x16e   :  { %3308 = vmatprep.subr.bf16.mxu1 %v3671_v43 }
 0x171   :  { %3309 = vmatpush3.bf16.msra.mxu1 %v3672_v44 }
 0x172   :  { %3310 = vmatprep.subr.bf16.mxu1 %v3673_v45 }
 0x175   :  { %3311 = vmatpush3.bf16.msra.mxu1 %v3674_v46 }
 0x176   :  { %3312 = vmatprep.subr.bf16.mxu1 %v3675_v47  ;;  %v3677_v47 = vld [vmem:[#allocation8 + $0x70] sm:$0xff]  }
 0x179   :  { %3313 = vmatpush3.bf16.msra.mxu1 %v3676_v48  ;;  %v3678_v48 = vld [vmem:[#allocation8 + $0x30] sm:$0xff]  }
 0x17a   :  { %3314 = vmatprep.subr.bf16.mxu1 %v3677_v47  ;;  %v3705_v47 = vld [vmem:[#allocation14] sm:$0xff]  }
 0x17d   :  { %3315 = vmatpush3.bf16.msra.mxu1 %v3678_v48  ;;  %v3706_v48 = vld [vmem:[#allocation14 + $0x8] sm:$0xff]  }
 0x17e   :  { %3316 = vmatprep.subr.bf16.mxu1 %v3679_v49  ;;  %v3707_v49 = vld [vmem:[#allocation14 + $0x10] sm:$0xff]  }
 0x181   :  { %3317 = vmatpush3.bf16.msra.mxu1 %v3680_v52  ;;  %v3708_v52 = vld [vmem:[#allocation14 + $0x18] sm:$0xff]  }
 0x1f7   :  { %v661_v56 = vpop.f32.mrb[0].mxu1 }
 0x1f8   :  { %v662_v57 = vadd.f32 %v661_v56, %v290_v54  ;;  %v663_v58 = vpop.f32.mrb[1].mxu1  ;;  %v4224_v54 = vmov 0.0  }
 0x1f9   :  { %v664_v59 = vadd.f32 %v663_v58, %v294_v55  ;;  %v665_v60 = vpop.f32.mrb[2].mxu1  ;;  %3360 = vmatprep.subr.bf16.mxu1 %v4224_v54  ;;  %v777_v55 = vld [vmem:[%s4684_s21] sm:$0x3] }
 0x1fa   :  { %v709_v61 = vmax.f32 %v662_v57, 0.0  ;;  %v666_v62 = vpop.f32.mrb[3].mxu1  ;;  %v786_v56 = vrot.slane %v777_v55, %v4518_v51  ;;  %v790_v57 = vrot.slane %v777_v55, %v4526_v53  ;;  %v3709_v55 = vld [vmem:[#allocation14 + $0x20] sm:$0xff]  }
 0x1fb   :  { %v710_v63 = vmax.f32 %v664_v59, 0.0 }
 0x1fc   :  { %v778_v0 = vpack.c.bf16 %v709_v61, %v709_v61 }
 0x1fd   :  { %v779_v1 = vpack.c.bf16 %v710_v63, %v710_v63 }
 0x1ff   :  { %1145 = vmatprep.mubr.bf16.mxu0 %v779_v1 }
 0x200   :  { %1146 = vmatmul.mubr.bf16.vlgmr.msra.gmra.mrb[0].mxu0 %v778_v0 }
 0x201   :  { %1155 = vmatpush1.bf16.msra.mxu0 %v3617_v2 }
 0x202   :  { %1156 = vmatprep.subr.bf16.mxu0 %v3622_v3  ;;  %v3681_v3 = vld [vmem:[#allocation10] sm:$0xff]  }
 0x205   :  { %1157 = vmatpush1.bf16.msra.mxu0 %v3620_v4 }
 0x206   :  { %1158 = vmatprep.subr.bf16.mxu0 %v3625_v5  ;;  %v3682_v5 = vld [vmem:[#allocation10 + $0x8] sm:$0xff]  }
 0x209   :  { %1159 = vmatpush1.bf16.msra.mxu0 %v3623_v6  ;;  %v3683_v6 = vld [vmem:[#allocation10 + $0x10] sm:$0xff]  }
 0x20a   :  { %1160 = vmatprep.subr.bf16.mxu0 %v3628_v7  ;;  %v3684_v7 = vld [vmem:[#allocation10 + $0x18] sm:$0xff]  }
 0x20d   :  { %1161 = vmatpush1.bf16.msra.mxu0 %v3626_v8  ;;  %v3685_v8 = vld [vmem:[#allocation10 + $0x20] sm:$0xff]  }
 0x20e   :  { %1162 = vmatprep.subr.bf16.mxu0 %v3631_v9  ;;  %v3686_v9 = vld [vmem:[#allocation10 + $0x28] sm:$0xff]  }
 0x211   :  { %1163 = vmatpush1.bf16.msra.mxu0 %v3629_v10  ;;  %v3687_v10 = vld [vmem:[#allocation10 + $0x30] sm:$0xff]  }
 0x212   :  { %1164 = vmatprep.subr.bf16.mxu0 %v3634_v11  ;;  %v3688_v11 = vld [vmem:[#allocation10 + $0x38] sm:$0xff]  }
 0x215   :  { %1165 = vmatpush1.bf16.msra.mxu0 %v3632_v12 }
 0x216   :  { %1166 = vmatprep.subr.bf16.mxu0 %v3637_v13  ;;  %v3105_v13 = vld [vmem:[%s4646_s6] ss:$0 sm:$0xff] }
 0x219   :  { %1167 = vmatpush1.bf16.msra.mxu0 %v3635_v14 }
 0x21a   :  { %1168 = vmatprep.subr.bf16.mxu0 %v3640_v15 }
 0x21d   :  { %1169 = vmatpush1.bf16.msra.mxu0 %v3638_v16 }
 0x21e   :  { %1170 = vmatprep.subr.bf16.mxu0 %v3643_v17 }
 0x221   :  { %1171 = vmatpush1.bf16.msra.mxu0 %v3641_v18 }
 0x222   :  { %1172 = vmatprep.subr.bf16.mxu0 %v3646_v19 }
 0x225   :  { %1173 = vmatpush1.bf16.msra.mxu0 %v3644_v20  ;;  %v3689_v20 = vld [vmem:[#allocation11] sm:$0xff]  }
 0x226   :  { %1174 = vmatprep.subr.bf16.mxu0 %v3649_v21 }
 0x229   :  { %1175 = vmatpush1.bf16.msra.mxu0 %v3647_v22  ;;  %v3690_v22 = vld [vmem:[#allocation11 + $0x8] sm:$0xff]  }
 0x22a   :  { %1176 = vmatprep.subr.bf16.mxu0 %v3652_v23  ;;  %v3691_v23 = vld [vmem:[#allocation11 + $0x10] sm:$0xff]  }
 0x22d   :  { %1177 = vmatpush1.bf16.msra.mxu0 %v3650_v24  ;;  %v3692_v24 = vld [vmem:[#allocation11 + $0x18] sm:$0xff]  }
 0x22e   :  { %1178 = vmatprep.subr.bf16.mxu0 %v3655_v25  ;;  %v3693_v25 = vld [vmem:[#allocation11 + $0x20] sm:$0xff]  }
 0x231   :  { %1179 = vmatpush1.bf16.msra.mxu0 %v3653_v26  ;;  %v3694_v26 = vld [vmem:[#allocation11 + $0x28] sm:$0xff]  }
 0x232   :  { %1180 = vmatprep.subr.bf16.mxu0 %v3658_v27  ;;  %v3695_v27 = vld [vmem:[#allocation11 + $0x30] sm:$0xff]  }
 0x235   :  { %1181 = vmatpush1.bf16.msra.mxu0 %v3656_v29  ;;  %v3696_v29 = vld [vmem:[#allocation11 + $0x38] sm:$0xff]  }
 0x236   :  { %1182 = vmatprep.subr.bf16.mxu0 %v3661_v31  ;;  %v3122_v31 = vld [vmem:[%s4648_s8] ss:$0 sm:$0xff] }
 0x237   :  { %v702_v36 = vpop.f32.mrb[4].mxu1 }
 0x238   :  { %v703_v37 = vadd.f32 %v702_v36, %v298_v32  ;;  %v704_v38 = vpop.f32.mrb[5].mxu1 }
 0x239   :  { %v705_v39 = vadd.f32 %v704_v38, %v302_v33  ;;  %v706_v40 = vpop.f32.mrb[6].mxu1  ;;  %1183 = vmatpush1.bf16.msra.mxu0 %v3659_v34  ;;  %v3697_v38 = vld [vmem:[#allocation13] sm:$0xff]  }
 0x23a   :  { %v711_v42 = vmax.f32 %v703_v37, 0.0  ;;  %v707_v43 = vpop.f32.mrb[7].mxu1  ;;  %1184 = vmatprep.subr.bf16.mxu0 %v3664_v35  ;;  %v3698_v40 = vld [vmem:[#allocation13 + $0x8] sm:$0xff]  }
 0x23b   :  { %v712_v44 = vmax.f32 %v705_v39, 0.0  ;;  %v3701_v43 = vld [vmem:[#allocation13 + $0x20] sm:$0xff]  }
 0x23c   :  { %v780_v46 = vpack.c.bf16 %v711_v42, %v711_v42  ;;  %v3700_v42 = vld [vmem:[#allocation13 + $0x18] sm:$0xff]  }
 0x23d   :  { %v781_v45 = vpack.c.bf16 %v712_v44, %v712_v44  ;;  %1185 = vmatpush1.bf16.msra.mxu0 %v3662_v41  ;;  %v3699_v41 = vld [vmem:[#allocation13 + $0x10] sm:$0xff]   ;;  %v3702_v44 = vld [vmem:[#allocation13 + $0x28] sm:$0xff]  }
 0x23e   :  { %3420 = vmatprep.subr.bf16.mxu0 %v4224_v54 }
 0x23f   :  { %1186 = vmatprep.mubr.bf16.mxu0 %v781_v45  ;;  %v3703_v45 = vld [vmem:[#allocation13 + $0x30] sm:$0xff]  }
 0x240   :  { %1187 = vmatmul.mubr.bf16.vlgmr.msra.gmra.mrb[0].mxu0 %v780_v46  ;;  %v3704_v46 = vld [vmem:[#allocation13 + $0x38] sm:$0xff]  }
 0x241   :  { %3436 = vmatprep.mubr.msk.bf16.mxu0 %vm4225_vm0, %v4224_v54  ;;  %3421 = vmatpush3.bf16.msra.mxu0 %v3705_v47  ;;  %v3785_v47 = vld [vmem:[#allocation17 + $0x100] ss:$16 sps:$4 sm:$0xff]  }
 0x242   :  { %3422 = vmatprep.subr.bf16.mxu0 %v4224_v54 }
 0x245   :  { %3423 = vmatpush3.bf16.msra.mxu0 %v3706_v48  ;;  %v3793_v48 = vld [vmem:[#allocation17 + $0x124] ss:$16 sps:$4 sm:$0xff]  }
 0x246   :  { %3424 = vmatprep.subr.bf16.mxu0 %v4224_v54 }
 0x249   :  { %3425 = vmatpush3.bf16.msra.mxu0 %v3707_v49  ;;  %v3791_v49 = vld [vmem:[#allocation17 + $0x120] ss:$16 sps:$4 sm:$0xff]  }
 0x24a   :  { %3426 = vmatprep.subr.bf16.mxu0 %v4224_v54 }
 0x24d   :  { %3427 = vmatpush3.bf16.msra.mxu0 %v3708_v52  ;;  %v3799_v52 = vld [vmem:[#allocation17 + $0x144] ss:$16 sps:$4 sm:$0xff]  }
 0x24e   :  { %3428 = vmatprep.subr.bf16.mxu0 %v4224_v54 }
 0x251   :  { %3429 = vmatpush3.bf16.msra.mxu0 %v3709_v55  ;;  %v3797_v55 = vld [vmem:[#allocation17 + $0x140] ss:$16 sps:$4 sm:$0xff]  }
 0x252   :  { %3430 = vmatprep.subr.bf16.mxu0 %v4224_v54 }
 0x313   :  { %v1188_v58 = vpop.f32.mrb[0].mxu0 }
 0x314   :  { %v3440_v59 = vadd.f32 %v1188_v58, %v786_v56  ;;  %v1190_v60 = vpop.f32.mrb[1].mxu0  ;;  %v3710_v56 = vld [vmem:[#allocation14 + $0x28] sm:$0xff]  }
 0x315   :  { %v3441_v61 = vadd.f32 %v1190_v60, %v790_v57  ;;  %v1192_v62 = vpop.f32.mrb[2].mxu0  ;;  %3431 = vmatpush3.bf16.msra.mxu0 %v3710_v56  ;;  %v3131_v57 = vld [vmem:[%s4650_s10] ss:$0 sm:$0xff]  ;;  %v3805_v56 = vld [vmem:[#allocation17 + $0x164] ss:$16 sps:$4 sm:$0xff]  }
 0x316   :  { %v1195_v63 = vmax.f32 %v3440_v59, 0.0  ;;  %v1193_v0 = vpop.f32.mrb[3].mxu0  ;;  %3432 = vmatprep.subr.bf16.mxu0 %v4224_v54 }
 0x317   :  { %v1196_v1 = vmax.f32 %v3441_v61, 0.0 }
 0x318   :  { %v1230_v4 = vpack.c.bf16 %v1195_v63, %v1195_v63 }
 0x319   :  { %v1231_v2 = vpack.c.bf16 %v1196_v1, %v1196_v1  ;;  %v3711_v1 = vld [vmem:[#allocation14 + $0x30] sm:$0xff]  }
 0x31a   :  { %3433 = vmatpush3.bf16.msra.mxu0 %v3711_v1 }
 0x31b   :  { %1366 = vmatprep.mubr.bf16.mxu1 %v1231_v2  ;;  %3434 = vmatprep.subr.bf16.mxu0 %v4224_v54  ;;  %v3712_v2 = vld [vmem:[#allocation14 + $0x38] sm:$0xff]  }
 0x31c   :  { %1367 = vmatmul.mubr.bf16.vlgmr.msra.gmra.mrb[8].mxu1 %v1230_v4  ;;  %v3715_v4 = vld [vmem:[#allocation16 + $0x4] ss:$8 sps:$4 sm:$0xff]  }
 0x31d   :  { %3361 = vmatpush3.bf16.msra.mxu1 %v3681_v3  ;;  %3376 = vmatprep.mubr.msk.bf16.mxu1 %vm4225_vm0, %v4224_v54  ;;  %v3713_v3 = vld [vmem:[#allocation16] ss:$8 sps:$4 sm:$0xff]  }
 0x31e   :  { %3362 = vmatprep.subr.bf16.mxu1 %v4224_v54  ;;  %3435 = vmatpush3.bf16.msra.mxu0 %v3712_v2 }
 0x321   :  { %3363 = vmatpush3.bf16.msra.mxu1 %v3682_v5  ;;  %v3718_v5 = vld [vmem:[#allocation16 + $0x14] ss:$8 sps:$4 sm:$0xff]  }
 0x322   :  { %3364 = vmatprep.subr.bf16.mxu1 %v4224_v54 }
 0x325   :  { %3365 = vmatpush3.bf16.msra.mxu1 %v3683_v6  ;;  %v3716_v6 = vld [vmem:[#allocation16 + $0x10] ss:$8 sps:$4 sm:$0xff]  }
 0x326   :  { %3366 = vmatprep.subr.bf16.mxu1 %v4224_v54 }
 0x329   :  { %3367 = vmatpush3.bf16.msra.mxu1 %v3684_v7  ;;  %v3721_v7 = vld [vmem:[#allocation16 + $0x24] ss:$8 sps:$4 sm:$0xff]  }
 0x32a   :  { %3368 = vmatprep.subr.bf16.mxu1 %v4224_v54 }
 0x32d   :  { %3369 = vmatpush3.bf16.msra.mxu1 %v3685_v8  ;;  %v3719_v8 = vld [vmem:[#allocation16 + $0x20] ss:$8 sps:$4 sm:$0xff]  }
 0x32e   :  { %3370 = vmatprep.subr.bf16.mxu1 %v4224_v54 }
 0x331   :  { %3371 = vmatpush3.bf16.msra.mxu1 %v3686_v9  ;;  %v3724_v9 = vld [vmem:[#allocation16 + $0x34] ss:$8 sps:$4 sm:$0xff]  }
 0x332   :  { %3372 = vmatprep.subr.bf16.mxu1 %v4224_v54 }
 0x335   :  { %3373 = vmatpush3.bf16.msra.mxu1 %v3687_v10  ;;  %v3722_v10 = vld [vmem:[#allocation16 + $0x30] ss:$8 sps:$4 sm:$0xff]  }
 0x336   :  { %3374 = vmatprep.subr.bf16.mxu1 %v4224_v54 }
 0x339   :  { %3375 = vmatpush3.bf16.msra.mxu1 %v3688_v11  ;;  %v3727_v11 = vld [vmem:[#allocation16 + $0x44] ss:$8 sps:$4 sm:$0xff]  }
 0x33a   :  { %3380 = vmatprep.subr.bf16.mxu1 %v4224_v54 }
 0x3ef   :  { %v3318_v12 = vpop.f32.mrb[8].mxu1 }
 0x3f0   :  { %v3319_v14 = vpop.f32.mrb[9].mxu1 }
 0x3f1   :  { %v3320_v15 = vadd.f32 %v3319_v14, %v3318_v12  ;;  %v3321_v16 = vpop.f32.mrb[10].mxu1  ;;  %v3730_v12 = vld [vmem:[#allocation16 + $0x54] ss:$8 sps:$4 sm:$0xff]   ;;  %v3733_v14 = vld [vmem:[#allocation16 + $0x64] ss:$8 sps:$4 sm:$0xff]  }
 0x3f2   :  { %v3322_v17 = vpop.f32.mrb[11].mxu1  ;;  %v3140_v16 = vld [vmem:[%s4652_s12] ss:$0 sm:$0xff] }
 0x3f3   :  { %v1369_v18 = vadd.f32 %v3320_v15, %v3105_v13  ;;  %v3728_v13 = vld [vmem:[#allocation16 + $0x50] ss:$8 sps:$4 sm:$0xff]   ;;  %v3731_v15 = vld [vmem:[#allocation16 + $0x60] ss:$8 sps:$4 sm:$0xff]  }
 0x3f5   :  { %v1374_v19 = vmax.f32 %v1369_v18, 0.0 }
 0x3f7   :  { %v1392_v21 = vpack.c.bf16 %v1374_v19, %v1374_v19 }
 0x3f9   :  { %3377 = vmatmul.mubr.bf16.vlgmr.msra.gmra.mrb[12].mxu1 %v1392_v21 }
 0x3fa   :  { %3381 = vmatpush3.bf16.msra.mxu1 %v3689_v20  ;;  %3396 = vmatprep.mubr.msk.bf16.mxu1 %vm4225_vm0, %v4224_v54 }
 0x3fb   :  { %3382 = vmatprep.subr.bf16.mxu1 %v4224_v54 }
 0x3fe   :  { %3383 = vmatpush3.bf16.msra.mxu1 %v3690_v22 }
 0x3ff   :  { %3384 = vmatprep.subr.bf16.mxu1 %v4224_v54 }
 0x402   :  { %3385 = vmatpush3.bf16.msra.mxu1 %v3691_v23 }
 0x403   :  { %3386 = vmatprep.subr.bf16.mxu1 %v4224_v54 }
 0x406   :  { %3387 = vmatpush3.bf16.msra.mxu1 %v3692_v24  ;;  %v3736_v24 = vld [vmem:[#allocation16 + $0x74] ss:$8 sps:$4 sm:$0xff]  }
 0x407   :  { %3388 = vmatprep.subr.bf16.mxu1 %v4224_v54 }
 0x40a   :  { %3389 = vmatpush3.bf16.msra.mxu1 %v3693_v25  ;;  %v3734_v25 = vld [vmem:[#allocation16 + $0x70] ss:$8 sps:$4 sm:$0xff]  }
 0x40b   :  { %3390 = vmatprep.subr.bf16.mxu1 %v4224_v54 }
 0x40e   :  { %3391 = vmatpush3.bf16.msra.mxu1 %v3694_v26  ;;  %v4226_v26 = vmov 0  }
 0x40f   :  { %3392 = vmatprep.subr.bf16.mxu1 %v4224_v54 }
 0x412   :  { %3393 = vmatpush3.bf16.msra.mxu1 %v3695_v27  ;;  %v3737_v27 = vld [vmem:[#allocation17] ss:$16 sps:$4 sm:$0xff]  }
 0x413   :  { %3394 = vmatprep.subr.bf16.mxu1 %v4224_v54 }
 0x416   :  { %3395 = vmatpush3.bf16.msra.mxu1 %v3696_v29  ;;  %v3739_v29 = vld [vmem:[#allocation17 + $0x4] ss:$16 sps:$4 sm:$0xff]  }
 0x417   :  { %3400 = vmatprep.subr.bf16.mxu1 %v4224_v54  ;;  %2387 = vmatprep.subr.bf16.mxu0 %v3739_v29  ;;  %v3814_v29 = vld [vmem:[#allocation17 + $0x18c] ss:$16 sps:$4 sm:$0xff]  }
 0x4cc   :  { %v1481_v32 = vpop.f32.mrb[12].mxu1 }
 0x4cd   :  { %v1482_v33 = vadd.f32 %v3122_v31, %v1481_v32  ;;  %v3378_v34 = vpop.f32.mrb[13].mxu1  ;;  %v3742_v31 = vld [vmem:[#allocation17 + $0xc] ss:$16 sps:$4 sm:$0xff]   ;;  %v3745_v32 = vld [vmem:[#allocation17 + $0x24] ss:$16 sps:$4 sm:$0xff]  }
 0x4ce   :  { %v1484_v35 = vpop.f32.mrb[14].mxu1  ;;  %v3751_v34 = vld [vmem:[#allocation17 + $0x44] ss:$16 sps:$4 sm:$0xff]  }
 0x4cf   :  { %v1487_v36 = vmax.f32 %v1482_v33, 0.0  ;;  %v3379_v37 = vpop.f32.mrb[15].mxu1  ;;  %v3743_v33 = vld [vmem:[#allocation17 + $0x20] ss:$16 sps:$4 sm:$0xff]  }
 0x4d0   :  { %v3749_v35 = vld [vmem:[#allocation17 + $0x40] ss:$16 sps:$4 sm:$0xff]  }
 0x4d1   :  { %v1505_v39 = vpack.c.bf16 %v1487_v36, %v1487_v36  ;;  %v3757_v36 = vld [vmem:[#allocation17 + $0x64] ss:$16 sps:$4 sm:$0xff]   ;;  %v3755_v37 = vld [vmem:[#allocation17 + $0x60] ss:$16 sps:$4 sm:$0xff]  }
 0x4d3   :  { %3397 = vmatmul.mubr.bf16.vlgmr.msra.gmra.mrb[16].mxu1 %v1505_v39  ;;  %v3761_v39 = vld [vmem:[#allocation17 + $0x80] ss:$16 sps:$4 sm:$0xff]  }
 0x4d4   :  { %3401 = vmatpush3.bf16.msra.mxu1 %v3697_v38  ;;  %3416 = vmatprep.mubr.msk.bf16.mxu1 %vm4225_vm0, %v4224_v54  ;;  %v3763_v38 = vld [vmem:[#allocation17 + $0x84] ss:$16 sps:$4 sm:$0xff]  }
 0x4d5   :  { %3402 = vmatprep.subr.bf16.mxu1 %v4224_v54 }
 0x4d8   :  { %3403 = vmatpush3.bf16.msra.mxu1 %v3698_v40  ;;  %v3769_v40 = vld [vmem:[#allocation17 + $0xa4] ss:$16 sps:$4 sm:$0xff]  }
 0x4d9   :  { %3404 = vmatprep.subr.bf16.mxu1 %v4224_v54 }
 0x4dc   :  { %3405 = vmatpush3.bf16.msra.mxu1 %v3699_v41  ;;  %v3767_v41 = vld [vmem:[#allocation17 + $0xa0] ss:$16 sps:$4 sm:$0xff]  }
 0x4dd   :  { %3406 = vmatprep.subr.bf16.mxu1 %v4224_v54 }
 0x4e0   :  { %3407 = vmatpush3.bf16.msra.mxu1 %v3700_v42  ;;  %v3775_v42 = vld [vmem:[#allocation17 + $0xc4] ss:$16 sps:$4 sm:$0xff]  }
 0x4e1   :  { %3408 = vmatprep.subr.bf16.mxu1 %v4224_v54 }
 0x4e4   :  { %3409 = vmatpush3.bf16.msra.mxu1 %v3701_v43  ;;  %v3773_v43 = vld [vmem:[#allocation17 + $0xc0] ss:$16 sps:$4 sm:$0xff]  }
 0x4e5   :  { %3410 = vmatprep.subr.bf16.mxu1 %v4224_v54 }
 0x4e8   :  { %3411 = vmatpush3.bf16.msra.mxu1 %v3702_v44  ;;  %v3781_v44 = vld [vmem:[#allocation17 + $0xe4] ss:$16 sps:$4 sm:$0xff]  }
 0x4e9   :  { %3412 = vmatprep.subr.bf16.mxu1 %v4224_v54 }
 0x4ec   :  { %3413 = vmatpush3.bf16.msra.mxu1 %v3703_v45  ;;  %v3779_v45 = vld [vmem:[#allocation17 + $0xe0] ss:$16 sps:$4 sm:$0xff]  }
 0x4ed   :  { %3414 = vmatprep.subr.bf16.mxu1 %v4224_v54  ;;  %v3725_v54 = vld [vmem:[#allocation16 + $0x40] ss:$8 sps:$4 sm:$0xff]  }
 0x4f0   :  { %3415 = vmatpush3.bf16.msra.mxu1 %v3704_v46  ;;  %v3787_v46 = vld [vmem:[#allocation17 + $0x104] ss:$16 sps:$4 sm:$0xff]  }
 0x4f1   :  { %1936 = vmatprep.subr.bf16.mxu1 %v3715_v4 }
 0x5a6   :  { %v1594_v58 = vpop.f32.mrb[16].mxu1 }
 0x5a7   :  { %v1595_v59 = vadd.f32 %v3131_v57, %v1594_v58  ;;  %v3398_v60 = vpop.f32.mrb[17].mxu1  ;;  %v3803_v57 = vld [vmem:[#allocation17 + $0x160] ss:$16 sps:$4 sm:$0xff]   ;;  %v3811_v58 = vld [vmem:[#allocation17 + $0x184] ss:$16 sps:$4 sm:$0xff]  }
 0x5a8   :  { %v1597_v61 = vpop.f32.mrb[18].mxu1  ;;  %v3817_v60 = vld [vmem:[#allocation17 + $0x1a4] ss:$16 sps:$4 sm:$0xff]  }
 0x5a9   :  { %v1600_v62 = vmax.f32 %v1595_v59, 0.0  ;;  %v3399_v63 = vpop.f32.mrb[19].mxu1  ;;  %v3809_v59 = vld [vmem:[#allocation17 + $0x180] ss:$16 sps:$4 sm:$0xff]  }
 0x5aa   :  { %v3815_v61 = vld [vmem:[#allocation17 + $0x1a0] ss:$16 sps:$4 sm:$0xff]  }
 0x5ab   :  { %v1618_v0 = vpack.c.bf16 %v1600_v62, %v1600_v62  ;;  %v3149_v62 = vld [vmem:[%s4654_s14] ss:$0 sm:$0xff] }
 0x5ad   :  { %3417 = vmatmul.mubr.bf16.vlgmr.msra.gmra.mrb[20].mxu1 %v1618_v0 }
 0x5ae   :  { %1937 = vmatpush1.bf16.msra.mxu1 %v3713_v3  ;;  %1968 = vmatprep.mubr.bf16.mxu1 %v4226_v26  ;;  %v3808_v26 = vld [vmem:[#allocation17 + $0x16c] ss:$16 sps:$4 sm:$0xff]  }
 0x5af   :  { %1938 = vmatprep.subr.bf16.mxu1 %v3718_v5  ;;  %v3740_v5 = vld [vmem:[#allocation17 + $0x8] ss:$16 sps:$4 sm:$0xff]  }
 0x5b2   :  { %1939 = vmatpush1.bf16.msra.mxu1 %v3716_v6 }
 0x5b3   :  { %1940 = vmatprep.subr.bf16.mxu1 %v3721_v7  ;;  %v3748_v7 = vld [vmem:[#allocation17 + $0x2c] ss:$16 sps:$4 sm:$0xff]  }
 0x5b6   :  { %1941 = vmatpush1.bf16.msra.mxu1 %v3719_v8  ;;  %v3746_v8 = vld [vmem:[#allocation17 + $0x28] ss:$16 sps:$4 sm:$0xff]  }
 0x5b7   :  { %1942 = vmatprep.subr.bf16.mxu1 %v3724_v9  ;;  %v3754_v9 = vld [vmem:[#allocation17 + $0x4c] ss:$16 sps:$4 sm:$0xff]  }
 0x5ba   :  { %1943 = vmatpush1.bf16.msra.mxu1 %v3722_v10  ;;  %v3752_v10 = vld [vmem:[#allocation17 + $0x48] ss:$16 sps:$4 sm:$0xff]  }
 0x5bb   :  { %1944 = vmatprep.subr.bf16.mxu1 %v3727_v11  ;;  %v3760_v11 = vld [vmem:[#allocation17 + $0x6c] ss:$16 sps:$4 sm:$0xff]  }
 0x5be   :  { %1945 = vmatpush1.bf16.msra.mxu1 %v3725_v54  ;;  %v3758_v54 = vld [vmem:[#allocation17 + $0x68] ss:$16 sps:$4 sm:$0xff]  }
 0x5bf   :  { %1946 = vmatprep.subr.bf16.mxu1 %v3730_v12  ;;  %v3766_v12 = vld [vmem:[#allocation17 + $0x8c] ss:$16 sps:$4 sm:$0xff]  }
 0x5c2   :  { %1947 = vmatpush1.bf16.msra.mxu1 %v3728_v13  ;;  %v3764_v13 = vld [vmem:[#allocation17 + $0x88] ss:$16 sps:$4 sm:$0xff]  }
 0x5c3   :  { %1948 = vmatprep.subr.bf16.mxu1 %v3733_v14  ;;  %v3772_v14 = vld [vmem:[#allocation17 + $0xac] ss:$16 sps:$4 sm:$0xff]  }
 0x5c6   :  { %1949 = vmatpush1.bf16.msra.mxu1 %v3731_v15  ;;  %v3770_v15 = vld [vmem:[#allocation17 + $0xa8] ss:$16 sps:$4 sm:$0xff]  }
 0x5c7   :  { %1950 = vmatprep.subr.bf16.mxu1 %v3736_v24  ;;  %v3802_v24 = vld [vmem:[#allocation17 + $0x14c] ss:$16 sps:$4 sm:$0xff]  }
 0x5ca   :  { %1951 = vmatpush1.bf16.msra.mxu1 %v3734_v25  ;;  %v3800_v25 = vld [vmem:[#allocation17 + $0x148] ss:$16 sps:$4 sm:$0xff]  }
 0x5cb   :  { %2428 = vmatprep.subr.bf16.mxu1 %v3742_v31  ;;  %v3812_v31 = vld [vmem:[#allocation17 + $0x188] ss:$16 sps:$4 sm:$0xff]  }
 0x680   :  { %v1707_v17 = vpop.f32.mrb[20].mxu1 }
 0x681   :  { %v1708_v18 = vadd.f32 %v3140_v16, %v1707_v17  ;;  %v3418_v19 = vpop.f32.mrb[21].mxu1  ;;  %v3778_v16 = vld [vmem:[#allocation17 + $0xcc] ss:$16 sps:$4 sm:$0xff]   ;;  %v3776_v17 = vld [vmem:[#allocation17 + $0xc8] ss:$16 sps:$4 sm:$0xff]  }
 0x682   :  { %v1710_v20 = vpop.f32.mrb[22].mxu1  ;;  %v3782_v19 = vld [vmem:[#allocation17 + $0xe8] ss:$16 sps:$4 sm:$0xff]  }
 0x683   :  { %v1713_v21 = vmax.f32 %v1708_v18, 0.0  ;;  %v3419_v22 = vpop.f32.mrb[23].mxu1  ;;  %v3784_v18 = vld [vmem:[#allocation17 + $0xec] ss:$16 sps:$4 sm:$0xff]  }
 0x684   :  { %v3790_v20 = vld [vmem:[#allocation17 + $0x10c] ss:$16 sps:$4 sm:$0xff]  }
 0x685   :  { %v1731_v23 = vpack.c.bf16 %v1713_v21, %v1713_v21  ;;  %v3788_v21 = vld [vmem:[#allocation17 + $0x108] ss:$16 sps:$4 sm:$0xff]   ;;  %v3796_v22 = vld [vmem:[#allocation17 + $0x12c] ss:$16 sps:$4 sm:$0xff]  }
 0x687   :  { %3437 = vmatmul.mubr.bf16.vlgmr.msra.gmra.mrb[4].mxu0 %v1731_v23  ;;  %v3794_v23 = vld [vmem:[#allocation17 + $0x128] ss:$16 sps:$4 sm:$0xff]  }
 0x688   :  { %2388 = vmatpush1.bf16.msra.mxu0 %v3737_v27  ;;  %v3806_v27 = vld [vmem:[#allocation17 + $0x168] ss:$16 sps:$4 sm:$0xff]  }
 0x689   :  { %2389 = vmatprep.subr.bf16.mxu0 %v3745_v32  ;;  %v3820_v32 = vld [vmem:[#allocation17 + $0x1ac] ss:$16 sps:$4 sm:$0xff]  }
 0x68c   :  { %2390 = vmatpush1.bf16.msra.mxu0 %v3743_v33  ;;  %v3818_v33 = vld [vmem:[#allocation17 + $0x1a8] ss:$16 sps:$4 sm:$0xff]  }
 0x68d   :  { %2391 = vmatprep.subr.bf16.mxu0 %v3751_v34  ;;  %v3823_v34 = vld [vmem:[#allocation17 + $0x1c4] ss:$16 sps:$4 sm:$0xff]  }
 0x690   :  { %2392 = vmatpush1.bf16.msra.mxu0 %v3749_v35  ;;  %v3826_v35 = vld [vmem:[#allocation17 + $0x1cc] ss:$16 sps:$4 sm:$0xff]  }
 0x691   :  { %2393 = vmatprep.subr.bf16.mxu0 %v3757_v36  ;;  %v3821_v36 = vld [vmem:[#allocation17 + $0x1c0] ss:$16 sps:$4 sm:$0xff]  }
 0x694   :  { %2394 = vmatpush1.bf16.msra.mxu0 %v3755_v37  ;;  %v3824_v37 = vld [vmem:[#allocation17 + $0x1c8] ss:$16 sps:$4 sm:$0xff]  }
 0x695   :  { %2395 = vmatprep.subr.bf16.mxu0 %v3763_v38  ;;  %v3829_v38 = vld [vmem:[#allocation17 + $0x1e4] ss:$16 sps:$4 sm:$0xff]  }
 0x698   :  { %2396 = vmatpush1.bf16.msra.mxu0 %v3761_v39  ;;  %v3832_v39 = vld [vmem:[#allocation17 + $0x1ec] ss:$16 sps:$4 sm:$0xff]  }
 0x699   :  { %2397 = vmatprep.subr.bf16.mxu0 %v3769_v40  ;;  %v3827_v40 = vld [vmem:[#allocation17 + $0x1e0] ss:$16 sps:$4 sm:$0xff]  }
 0x69c   :  { %2398 = vmatpush1.bf16.msra.mxu0 %v3767_v41  ;;  %v3830_v41 = vld [vmem:[#allocation17 + $0x1e8] ss:$16 sps:$4 sm:$0xff]  }
 0x69d   :  { %2399 = vmatprep.subr.bf16.mxu0 %v3775_v42  ;;  %v3835_v42 = vld [vmem:[#allocation19 + $0x4] ss:$8 sps:$4 sm:$0xff]  }
 0x6a0   :  { %2400 = vmatpush1.bf16.msra.mxu0 %v3773_v43  ;;  %v1843_v43 = vld [vmem:[%s4656_s16] sm:$0x3] }
 0x6a1   :  { %2401 = vmatprep.subr.bf16.mxu0 %v3781_v44  ;;  %v1849_v44 = vrot.slane %v1843_v43, %v4518_v51 }
 0x6a4   :  { %2402 = vmatpush1.bf16.msra.mxu0 %v3779_v45  ;;  %v1853_v45 = vrot.slane %v1843_v43, %v4526_v53 }
 0x6a5   :  { %2403 = vmatprep.subr.bf16.mxu0 %v3787_v46 }
 0x6a8   :  { %2404 = vmatpush1.bf16.msra.mxu0 %v3785_v47 }
 0x6a9   :  { %2405 = vmatprep.subr.bf16.mxu0 %v3793_v48 }
 0x6ac   :  { %2406 = vmatpush1.bf16.msra.mxu0 %v3791_v49 }
 0x6ad   :  { %2407 = vmatprep.subr.bf16.mxu0 %v3799_v52 }
 0x6b0   :  { %2408 = vmatpush1.bf16.msra.mxu0 %v3797_v55 }
 0x6b1   :  { %2409 = vmatprep.subr.bf16.mxu0 %v3805_v56 }
 0x6b4   :  { %2410 = vmatpush1.bf16.msra.mxu0 %v3803_v57 }
 0x6b5   :  { %2411 = vmatprep.subr.bf16.mxu0 %v3811_v58 }
 0x6b8   :  { %2412 = vmatpush1.bf16.msra.mxu0 %v3809_v59  ;;  %v3833_v59 = vld [vmem:[#allocation19] ss:$8 sps:$4 sm:$0xff]  }
 0x6b9   :  { %2413 = vmatprep.subr.bf16.mxu0 %v3817_v60 }
 0x6bc   :  { %2414 = vmatpush1.bf16.msra.mxu0 %v3815_v61  ;;  %v3838_v61 = vld [vmem:[#allocation19 + $0x14] ss:$8 sps:$4 sm:$0xff]  }
 0x6bd   :  { %2415 = vmatprep.subr.bf16.mxu0 %v3823_v34 }
 0x6c0   :  { %2416 = vmatpush1.bf16.msra.mxu0 %v3821_v36 }
 0x6c1   :  { %2417 = vmatprep.subr.bf16.mxu0 %v3829_v38 }
 0x6c4   :  { %2418 = vmatpush1.bf16.msra.mxu0 %v3827_v40 }
 0x6c5   :  { %2873 = vmatprep.subr.bf16.mxu0 %v3835_v42 }
 0x75a   :  { %v1820_v63 = vpop.f32.mrb[4].mxu0 }
 0x75b   :  { %v1821_v0 = vadd.f32 %v3149_v62, %v1820_v63  ;;  %v3438_v1 = vpop.f32.mrb[5].mxu0  ;;  %v3836_v62 = vld [vmem:[#allocation19 + $0x10] ss:$8 sps:$4 sm:$0xff]   ;;  %v3841_v63 = vld [vmem:[#allocation19 + $0x24] ss:$8 sps:$4 sm:$0xff]  }
 0x75c   :  { %v1823_v2 = vpop.f32.mrb[6].mxu0  ;;  %v3844_v1 = vld [vmem:[#allocation19 + $0x34] ss:$8 sps:$4 sm:$0xff]  }
 0x75d   :  { %v1826_v3 = vmax.f32 %v1821_v0, 0.0  ;;  %v3439_v4 = vpop.f32.mrb[7].mxu0  ;;  %v3839_v0 = vld [vmem:[#allocation19 + $0x20] ss:$8 sps:$4 sm:$0xff]   ;;  %v3842_v2 = vld [vmem:[#allocation19 + $0x30] ss:$8 sps:$4 sm:$0xff]  }
 0x75e   :  { %v3845_v4 = vld [vmem:[#allocation19 + $0x40] ss:$8 sps:$4 sm:$0xff]  }
 0x75f   :  { %v1844_v6 = vpack.c.bf16 %v1826_v3, %v1826_v3  ;;  %v3847_v3 = vld [vmem:[#allocation19 + $0x44] ss:$8 sps:$4 sm:$0xff]  }
 0x761   :  { %1969 = vmatmul.mubr.bf16.vlgmr.msra.gmra.mrb[24].mxu1 %v1844_v6  ;;  %v3848_v6 = vld [vmem:[#allocation19 + $0x50] ss:$8 sps:$4 sm:$0xff]  }
 0x762   :  { %2429 = vmatpush1.bf16.msra.mxu1 %v3740_v5  ;;  %v3850_v5 = vld [vmem:[#allocation19 + $0x54] ss:$8 sps:$4 sm:$0xff]  }
 0x763   :  { %2430 = vmatprep.subr.bf16.mxu1 %v3748_v7  ;;  %v3853_v7 = vld [vmem:[#allocation19 + $0x64] ss:$8 sps:$4 sm:$0xff]  }
 0x766   :  { %2431 = vmatpush1.bf16.msra.mxu1 %v3746_v8  ;;  %v3851_v8 = vld [vmem:[#allocation19 + $0x60] ss:$8 sps:$4 sm:$0xff]  }
 0x767   :  { %2432 = vmatprep.subr.bf16.mxu1 %v3754_v9  ;;  %v3856_v9 = vld [vmem:[#allocation19 + $0x74] ss:$8 sps:$4 sm:$0xff]  }
 0x76a   :  { %2433 = vmatpush1.bf16.msra.mxu1 %v3752_v10  ;;  %v3854_v10 = vld [vmem:[#allocation19 + $0x70] ss:$8 sps:$4 sm:$0xff]  }
 0x76b   :  { %2434 = vmatprep.subr.bf16.mxu1 %v3760_v11  ;;  %v3859_v11 = vld [vmem:[#allocation19 + $0x84] ss:$8 sps:$4 sm:$0xff]  }
 0x76e   :  { %2435 = vmatpush1.bf16.msra.mxu1 %v3758_v54  ;;  %v3857_v54 = vld [vmem:[#allocation19 + $0x80] ss:$8 sps:$4 sm:$0xff]  }
 0x76f   :  { %2436 = vmatprep.subr.bf16.mxu1 %v3766_v12  ;;  %v3862_v12 = vld [vmem:[#allocation19 + $0x94] ss:$8 sps:$4 sm:$0xff]  }
 0x772   :  { %2437 = vmatpush1.bf16.msra.mxu1 %v3764_v13  ;;  %v3860_v13 = vld [vmem:[#allocation19 + $0x90] ss:$8 sps:$4 sm:$0xff]  }
 0x773   :  { %2438 = vmatprep.subr.bf16.mxu1 %v3772_v14  ;;  %v3865_v14 = vld [vmem:[#allocation19 + $0xa4] ss:$8 sps:$4 sm:$0xff]  }
 0x776   :  { %2439 = vmatpush1.bf16.msra.mxu1 %v3770_v15  ;;  %v3863_v15 = vld [vmem:[#allocation19 + $0xa0] ss:$8 sps:$4 sm:$0xff]  }
 0x777   :  { %2440 = vmatprep.subr.bf16.mxu1 %v3778_v16  ;;  %v3868_v16 = vld [vmem:[#allocation19 + $0xb4] ss:$8 sps:$4 sm:$0xff]  }
 0x77a   :  { %2441 = vmatpush1.bf16.msra.mxu1 %v3776_v17  ;;  %v3866_v17 = vld [vmem:[#allocation19 + $0xb0] ss:$8 sps:$4 sm:$0xff]  }
 0x77b   :  { %2442 = vmatprep.subr.bf16.mxu1 %v3784_v18  ;;  %v3871_v18 = vld [vmem:[#allocation19 + $0xc4] ss:$8 sps:$4 sm:$0xff]  }
 0x77e   :  { %2443 = vmatpush1.bf16.msra.mxu1 %v3782_v19  ;;  %v3869_v19 = vld [vmem:[#allocation19 + $0xc0] ss:$8 sps:$4 sm:$0xff]  }
 0x77f   :  { %2444 = vmatprep.subr.bf16.mxu1 %v3790_v20  ;;  %v3874_v20 = vld [vmem:[#allocation19 + $0xd4] ss:$8 sps:$4 sm:$0xff]  }
 0x782   :  { %2445 = vmatpush1.bf16.msra.mxu1 %v3788_v21  ;;  %v3872_v21 = vld [vmem:[#allocation19 + $0xd0] ss:$8 sps:$4 sm:$0xff]  }
 0x783   :  { %2446 = vmatprep.subr.bf16.mxu1 %v3796_v22  ;;  %v3877_v22 = vld [vmem:[#allocation19 + $0xe4] ss:$8 sps:$4 sm:$0xff]  }
 0x786   :  { %2447 = vmatpush1.bf16.msra.mxu1 %v3794_v23  ;;  %v3875_v23 = vld [vmem:[#allocation19 + $0xe0] ss:$8 sps:$4 sm:$0xff]  }
 0x787   :  { %2448 = vmatprep.subr.bf16.mxu1 %v3802_v24  ;;  %v3880_v24 = vld [vmem:[#allocation19 + $0xf4] ss:$8 sps:$4 sm:$0xff]  }
 0x78a   :  { %2449 = vmatpush1.bf16.msra.mxu1 %v3800_v25  ;;  %v3878_v25 = vld [vmem:[#allocation19 + $0xf0] ss:$8 sps:$4 sm:$0xff]  }
 0x78b   :  { %2450 = vmatprep.subr.bf16.mxu1 %v3808_v26  ;;  %v3883_v26 = vld [vmem:[#allocation19 + $0x104] ss:$8 sps:$4 sm:$0xff]  }
 0x78e   :  { %2451 = vmatpush1.bf16.msra.mxu1 %v3806_v27  ;;  %v4608_v27 = vld [vmem:[%s4658_s18] sm:$0xf] }
 0x78f   :  { %2452 = vmatprep.subr.bf16.mxu1 %v3814_v29  ;;  %v2050_v29 = vrot.slane %v4608_v27, %v4518_v51 }
 0x792   :  { %2453 = vmatpush1.bf16.msra.mxu1 %v3812_v31  ;;  %v2054_v31 = vrot.slane %v4608_v27, %v4526_v53 }
 0x793   :  { %2454 = vmatprep.subr.bf16.mxu1 %v3820_v32  ;;  %v2062_v32 = vrot.slane %v4608_v27, %v301_v30 }
 0x796   :  { %2455 = vmatpush1.bf16.msra.mxu1 %v3818_v33 }
 0x797   :  { %2456 = vmatprep.subr.bf16.mxu1 %v3826_v35 }
 0x79a   :  { %2457 = vmatpush1.bf16.msra.mxu1 %v3824_v37 }
 0x79b   :  { %2458 = vmatprep.subr.bf16.mxu1 %v3832_v39 }
 0x79e   :  { %2459 = vmatpush1.bf16.msra.mxu1 %v3830_v41 }
 0x834   :  { %v1970_v46 = vpop.f32.mrb[24].mxu1 }
 0x835   :  { %v1971_v47 = vadd.f32 %v1970_v46, %v1849_v44  ;;  %v1972_v48 = vpop.f32.mrb[25].mxu1 }
 0x836   :  { %v1973_v49 = vadd.f32 %v1972_v48, %v1853_v45  ;;  %v1974_v52 = vpop.f32.mrb[26].mxu1  ;;  %v3881_v48 = vld [vmem:[#allocation19 + $0x100] ss:$8 sps:$4 sm:$0xff]  }
 0x837   :  { %v1977_v55 = vmax.f32 %v1971_v47, 0.0  ;;  %v1975_v56 = vpop.f32.mrb[27].mxu1  ;;  %v3886_v52 = vld [vmem:[#allocation19 + $0x114] ss:$8 sps:$4 sm:$0xff]  }
 0x838   :  { %v1978_v57 = vmax.f32 %v1973_v49, 0.0  ;;  %v3889_v56 = vld [vmem:[#allocation19 + $0x124] ss:$8 sps:$4 sm:$0xff]  }
 0x839   :  { %v2044_v60 = vpack.c.bf16 %v1977_v55, %v1977_v55  ;;  %v3884_v55 = vld [vmem:[#allocation19 + $0x110] ss:$8 sps:$4 sm:$0xff]  }
 0x83a   :  { %v2045_v58 = vpack.c.bf16 %v1978_v57, %v1978_v57  ;;  %v3887_v57 = vld [vmem:[#allocation19 + $0x120] ss:$8 sps:$4 sm:$0xff]  }
 0x83c   :  { %2419 = vmatprep.mubr.bf16.mxu0 %v2045_v58  ;;  %2460 = vmatprep.mubr.bf16.mxu1 %v2045_v58  ;;  %v3892_v58 = vld [vmem:[#allocation19 + $0x134] ss:$8 sps:$4 sm:$0xff]  }
 0x83d   :  { %2420 = vmatmul.mubr.bf16.vlgmr.msra.gmra.mrb[8].mxu0 %v2044_v60  ;;  %2461 = vmatmul.mubr.bf16.vlgmr.msra.gmra.mrb[28].mxu1 %v2044_v60  ;;  %v3895_v60 = vld [vmem:[#allocation19 + $0x144] ss:$8 sps:$4 sm:$0xff]  }
 0x83e   :  { %2874 = vmatpush1.bf16.msra.mxu0 %v3833_v59  ;;  %v3890_v59 = vld [vmem:[#allocation19 + $0x130] ss:$8 sps:$4 sm:$0xff]  }
 0x83f   :  { %2875 = vmatprep.subr.bf16.mxu0 %v3838_v61  ;;  %v3893_v61 = vld [vmem:[#allocation19 + $0x140] ss:$8 sps:$4 sm:$0xff]  }
 0x842   :  { %2876 = vmatpush1.bf16.msra.mxu0 %v3836_v62  ;;  %v3898_v62 = vld [vmem:[#allocation19 + $0x154] ss:$8 sps:$4 sm:$0xff]  }
 0x843   :  { %2877 = vmatprep.subr.bf16.mxu0 %v3841_v63  ;;  %v3896_v63 = vld [vmem:[#allocation19 + $0x150] ss:$8 sps:$4 sm:$0xff]  }
 0x846   :  { %2878 = vmatpush1.bf16.msra.mxu0 %v3839_v0  ;;  %v3901_v0 = vld [vmem:[#allocation19 + $0x164] ss:$8 sps:$4 sm:$0xff]  }
 0x847   :  { %2879 = vmatprep.subr.bf16.mxu0 %v3844_v1  ;;  %v3899_v1 = vld [vmem:[#allocation19 + $0x160] ss:$8 sps:$4 sm:$0xff]  }
 0x84a   :  { %2880 = vmatpush1.bf16.msra.mxu0 %v3842_v2  ;;  %v3904_v2 = vld [vmem:[#allocation19 + $0x174] ss:$8 sps:$4 sm:$0xff]  }
 0x84b   :  { %2881 = vmatprep.subr.bf16.mxu0 %v3847_v3  ;;  %v3902_v3 = vld [vmem:[#allocation19 + $0x170] ss:$8 sps:$4 sm:$0xff]  }
 0x84e   :  { %2882 = vmatpush1.bf16.msra.mxu0 %v3845_v4  ;;  %v3907_v4 = vld [vmem:[#allocation19 + $0x184] ss:$8 sps:$4 sm:$0xff]  }
 0x84f   :  { %2883 = vmatprep.subr.bf16.mxu0 %v3850_v5  ;;  %v3905_v5 = vld [vmem:[#allocation19 + $0x180] ss:$8 sps:$4 sm:$0xff]  }
 0x852   :  { %2884 = vmatpush1.bf16.msra.mxu0 %v3848_v6  ;;  %v3910_v6 = vld [vmem:[#allocation19 + $0x194] ss:$8 sps:$4 sm:$0xff]  }
 0x853   :  { %2885 = vmatprep.subr.bf16.mxu0 %v3853_v7  ;;  %v3908_v7 = vld [vmem:[#allocation19 + $0x190] ss:$8 sps:$4 sm:$0xff]  }
 0x856   :  { %2886 = vmatpush1.bf16.msra.mxu0 %v3851_v8  ;;  %v3913_v8 = vld [vmem:[#allocation19 + $0x1a4] ss:$8 sps:$4 sm:$0xff]  }
 0x857   :  { %2887 = vmatprep.subr.bf16.mxu0 %v3856_v9  ;;  %v3911_v9 = vld [vmem:[#allocation19 + $0x1a0] ss:$8 sps:$4 sm:$0xff]  }
 0x85a   :  { %2888 = vmatpush1.bf16.msra.mxu0 %v3854_v10  ;;  %v3916_v10 = vld [vmem:[#allocation19 + $0x1b4] ss:$8 sps:$4 sm:$0xff]  }
 0x85b   :  { %2889 = vmatprep.subr.bf16.mxu0 %v3859_v11  ;;  %v3914_v11 = vld [vmem:[#allocation19 + $0x1b0] ss:$8 sps:$4 sm:$0xff]  }
 0x85e   :  { %2890 = vmatpush1.bf16.msra.mxu0 %v3857_v54  ;;  %v3919_v54 = vld [vmem:[#allocation19 + $0x1c4] ss:$8 sps:$4 sm:$0xff]  }
 0x85f   :  { %2891 = vmatprep.subr.bf16.mxu0 %v3862_v12  ;;  %v3917_v12 = vld [vmem:[#allocation19 + $0x1c0] ss:$8 sps:$4 sm:$0xff]  }
 0x862   :  { %2892 = vmatpush1.bf16.msra.mxu0 %v3860_v13  ;;  %v3922_v13 = vld [vmem:[#allocation19 + $0x1d4] ss:$8 sps:$4 sm:$0xff]  }
 0x863   :  { %2893 = vmatprep.subr.bf16.mxu0 %v3865_v14  ;;  %v3920_v14 = vld [vmem:[#allocation19 + $0x1d0] ss:$8 sps:$4 sm:$0xff]  }
 0x866   :  { %2894 = vmatpush1.bf16.msra.mxu0 %v3863_v15  ;;  %v2058_v15 = vrot.slane %v4608_v27, %v297_v28  ;;  %v2546_v28 = vrot.slane %v2537_v50, %v4518_v51 }
 0x867   :  { %2895 = vmatprep.subr.bf16.mxu0 %v3868_v16  ;;  %v3925_v16 = vld [vmem:[#allocation19 + $0x1e4] ss:$8 sps:$4 sm:$0xff]  }
 0x86a   :  { %2896 = vmatpush1.bf16.msra.mxu0 %v3866_v17  ;;  %v3923_v17 = vld [vmem:[#allocation19 + $0x1e0] ss:$8 sps:$4 sm:$0xff]  }
 0x86b   :  { %2897 = vmatprep.subr.bf16.mxu0 %v3871_v18 }
 0x86e   :  { %2898 = vmatpush1.bf16.msra.mxu0 %v3869_v19  ;;  %v3928_v19 = vld [vmem:[#allocation19 + $0x1f4] ss:$8 sps:$4 sm:$0xff]  }
 0x86f   :  { %2899 = vmatprep.subr.bf16.mxu0 %v3874_v20  ;;  %v3926_v20 = vld [vmem:[#allocation19 + $0x1f0] ss:$8 sps:$4 sm:$0xff]  }
 0x872   :  { %2900 = vmatpush1.bf16.msra.mxu0 %v3872_v21 }
 0x873   :  { %2901 = vmatprep.subr.bf16.mxu0 %v3877_v22 }
 0x876   :  { %2902 = vmatpush1.bf16.msra.mxu0 %v3875_v23  ;;  %v2550_v23 = vrot.slane %v2537_v50, %v4526_v53 }
 0x877   :  { %2903 = vmatprep.subr.bf16.mxu0 %v3880_v24 }
 0x87a   :  { %2904 = vmatpush1.bf16.msra.mxu0 %v3878_v25 }
 0x87b   :  { %2914 = vmatprep.subr.bf16.mxu0 %v3883_v26 }
 0x910   :  { %v2421_v33 = vpop.f32.mrb[8].mxu0  ;;  %v4617_v34 = vpop.f32.mrb[28].mxu1 }
 0x911   :  { %v2422_v35 = vadd.f32 %v2421_v33, %v2050_v29  ;;  %v2423_v36 = vpop.f32.mrb[9].mxu0  ;;  %v2464_v37 = vpop.f32.mrb[29].mxu1  ;;  %v2463_v18 = vadd.f32 %v4617_v34, %v2058_v15 }
 0x912   :  { %v2424_v38 = vadd.f32 %v2423_v36, %v2054_v31  ;;  %v2465_v39 = vadd.f32 %v2464_v37, %v2062_v32  ;;  %v2425_v40 = vpop.f32.mrb[10].mxu0  ;;  %v2466_v41 = vpop.f32.mrb[30].mxu1 }
 0x913   :  { %v2469_v42 = vmax.f32 %v2422_v35, 0.0  ;;  %v2426_v43 = vpop.f32.mrb[11].mxu0  ;;  %v2467_v44 = vpop.f32.mrb[31].mxu1  ;;  %v2471_v21 = vmax.f32 %v2463_v18, 0.0 }
 0x914   :  { %v2470_v45 = vmax.f32 %v2424_v38, 0.0  ;;  %v2472_v46 = vmax.f32 %v2465_v39, 0.0 }
 0x915   :  { %v2538_v49 = vpack.c.bf16 %v2469_v42, %v2469_v42  ;;  %v2540_v22 = vpack.c.bf16 %v2471_v21, %v2471_v21 }
 0x916   :  { %v2539_v47 = vpack.c.bf16 %v2470_v45, %v2470_v45  ;;  %v2541_v30 = vpack.c.bf16 %v2472_v46, %v2472_v46 }
 0x918   :  { %2905 = vmatprep.mubr.bf16.mxu0 %v2539_v47 }
 0x919   :  { %2906 = vmatmul.mubr.bf16.vlgmr.msra.gmra.mrb[12].mxu0 %v2538_v49 }
 0x91a   :  { %2915 = vmatpush1.bf16.msra.mxu0 %v3881_v48  ;;  %2946 = vmatprep.mubr.bf16.mxu0 %v2541_v30 }
 0x91b   :  { %2916 = vmatprep.subr.bf16.mxu0 %v3886_v52 }
 0x91e   :  { %2917 = vmatpush1.bf16.msra.mxu0 %v3884_v55 }
 0x91f   :  { %2918 = vmatprep.subr.bf16.mxu0 %v3889_v56 }
 0x922   :  { %2919 = vmatpush1.bf16.msra.mxu0 %v3887_v57 }
 0x923   :  { %2920 = vmatprep.subr.bf16.mxu0 %v3892_v58 }
 0x926   :  { %2921 = vmatpush1.bf16.msra.mxu0 %v3890_v59 }
 0x927   :  { %2922 = vmatprep.subr.bf16.mxu0 %v3895_v60 }
 0x92a   :  { %2923 = vmatpush1.bf16.msra.mxu0 %v3893_v61 }
 0x92b   :  { %2924 = vmatprep.subr.bf16.mxu0 %v3898_v62 }
 0x92e   :  { %2925 = vmatpush1.bf16.msra.mxu0 %v3896_v63 }
 0x92f   :  { %2926 = vmatprep.subr.bf16.mxu0 %v3901_v0 }
 0x932   :  { %2927 = vmatpush1.bf16.msra.mxu0 %v3899_v1 }
 0x933   :  { %2928 = vmatprep.subr.bf16.mxu0 %v3904_v2 }
 0x936   :  { %2929 = vmatpush1.bf16.msra.mxu0 %v3902_v3 }
 0x937   :  { %2930 = vmatprep.subr.bf16.mxu0 %v3907_v4 }
 0x93a   :  { %2931 = vmatpush1.bf16.msra.mxu0 %v3905_v5 }
 0x93b   :  { %2932 = vmatprep.subr.bf16.mxu0 %v3910_v6 }
 0x93e   :  { %2933 = vmatpush1.bf16.msra.mxu0 %v3908_v7 }
 0x93f   :  { %2934 = vmatprep.subr.bf16.mxu0 %v3913_v8 }
 0x942   :  { %2935 = vmatpush1.bf16.msra.mxu0 %v3911_v9 }
 0x943   :  { %2936 = vmatprep.subr.bf16.mxu0 %v3916_v10 }
 0x946   :  { %2937 = vmatpush1.bf16.msra.mxu0 %v3914_v11 }
 0x947   :  { %2938 = vmatprep.subr.bf16.mxu0 %v3919_v54 }
 0x94a   :  { %2939 = vmatpush1.bf16.msra.mxu0 %v3917_v12 }
 0x94b   :  { %2940 = vmatprep.subr.bf16.mxu0 %v3922_v13 }
 0x94e   :  { %2941 = vmatpush1.bf16.msra.mxu0 %v3920_v14 }
 0x94f   :  { %2942 = vmatprep.subr.bf16.mxu0 %v3925_v16 }
 0x952   :  { %2943 = vmatpush1.bf16.msra.mxu0 %v3923_v17 }
 0x953   :  { %2944 = vmatprep.subr.bf16.mxu0 %v3928_v19 }
 0x956   :  { %2945 = vmatpush1.bf16.msra.mxu0 %v3926_v20 }
 0x959   :  { %2947 = vmatmul.mubr.bf16.vlgmr.msra.gmra.mrb[12].mxu0 %v2540_v22 }
 0xa2c   :  { %v2948_v24 = vpop.f32.mrb[12].mxu0 }
 0xa2d   :  { %v3442_v25 = vadd.f32 %v2948_v24, %v2546_v28  ;;  %v2950_v26 = vpop.f32.mrb[13].mxu0 }
 0xa2e   :  { %v3443_v27 = vadd.f32 %v2950_v26, %v2550_v23  ;;  %v2952_v29 = vpop.f32.mrb[14].mxu0 }
 0xa2f   :  { %2955 = vst [vmem:[#allocation20] sm:$0xff] %v3442_v25  ;;  %v2953_v31 = vpop.f32.mrb[15].mxu0 }
 0xa30   :  { %2956 = vst [vmem:[#allocation20 + $0x8] sm:$0xff] %v3443_v27 }
 0xa31   :  { %4182 = shalt.err (!%p4179_p8)
}
 0xa32   :  { %s4686_s24 = sld [smem:[#allocation35_spill]] }
 0xa38   :  { %s4183_s15 = scalar_lea.hbm %s4686_s24, 256 }
 0xa39   :  { %p4184_p9 = scmp.ne.s32.totalorder %s4686_s24, %s4183_s15  ;;  %p4187_p10 = scmp.lt.u32.totalorder %s4183_s15, %s4686_s24 }
 0xa3b   :  { %p4189_p11 = pnand %p4187_p10, %p4184_p9 }
 0xa3d   :  { %4192 = shalt.err (!%p4189_p11)
}
 0xa3e   :  { %2966 = dma.vmem_to_hbm [thread:$0]  %s2964_s2, 256, %s4686_s24, [#allocation4]  }
 0xa3f   :  { %4205 = dma.done.wait [#allocation4], 256  }
 0xa40   :  { %4206 = vsyncadd [#allocation4], 4294967040 }
 0xa41   :  { %2970 = vsyncpa [#allocation3], 1 }
 0xa42   :  { %2971 = vsyncpa [#allocation6], 1 }
 0xa43   :  { %2972 = vsyncpa [#allocation9], 1 }
 0xa44   :  { %2973 = vsyncpa [#allocation12], 1 }
 0xa45   :  { %2974 = vsyncpa [#allocation15], 1 }
 0xa46   :  { %2975 = vsyncpa [#allocation18], 1 }
 0xa47   :  { %2976 = vsyncpa [#allocation4], 1 }

</bundles_post_ra>
